<compile_context>
chip_gen: v6e
topology: v6e:2x2x1
jax: 0.10.0
libtpu: 0.0.40
codegen_flags: <defaults>
</compile_context>

<pallas_src>
import math

import jax
import jax.numpy as jnp
from jax.experimental import pallas as pl
from jax.experimental.pallas import tpu as pltpu


def _round_up(x: int, m: int) -> int:
    return ((x + m - 1) // m) * m


def _mecch_kernel(a_ref, hs_ref, hd_ref, inv_ref, conv_ref, w_ref, b_ref,
                  out_ref, fused_ref, acc_ref):
    """One (dst_tile i, src_tile k, metapath m) grid step.

    a_ref    : (1, TD, TS)  int8  adjacency tile of metapath m (dominant stream)
    hs_ref   : (TS, Dp)     bf16  source-feature tile (resident across m)
    hd_ref   : (TD, Dp)     f32   dst features (resident per dst tile)
    inv_ref  : (TD, M)      f32   1/(deg_m+1), one column per metapath
    conv_ref : (M, Dp)      f32   conv fusion weights (fully resident)
    w_ref    : (Dp, Dop)    f32   output Linear weight, transposed (resident)
    b_ref    : (1, Dop)     f32   output Linear bias
    out_ref  : (TD, Dop)    f32   out = fused @ W^T + b  (written at last step)
    fused_ref: (TD, Dp)     f32   fused embedding        (written at last step)
    acc_ref  : (M, TD, Dp)  f32   raw per-metapath neighbor-sum accumulators
    """
    k = pl.program_id(1)
    m = pl.program_id(2)
    n_k = pl.num_programs(1)
    n_m = pl.num_programs(2)
    n_meta = acc_ref.shape[0]

    # ---- init (once per dst tile) -------------------------------------------
    @pl.when(jnp.logical_and(k == 0, m == 0))
    def _init():
        acc_ref[...] = jnp.zeros_like(acc_ref)

    # ---- main reduction: int8 A tile -> bf16 (VPU, hidden under DMA) -> MXU --
    a = a_ref[0].astype(jnp.bfloat16)
    partial = jnp.dot(a, hs_ref[...], preferred_element_type=jnp.float32)
    acc_ref[m] = acc_ref[m] + partial

    # ---- epilogue (once per dst tile): scales, fusion, Linear ----------------
    @pl.when(jnp.logical_and(k == n_k - 1, m == n_m - 1))
    def _finalize():
        hd = hd_ref[...]
        inv_all = inv_ref[...]        # (TD, M)
        conv_all = conv_ref[...]      # (M, Dp)
        fused = jnp.zeros(fused_ref.shape, jnp.float32)
        for mm in range(n_meta):      # M is tiny and static -> unrolled
            inv_col = inv_all[:, mm:mm + 1]          # (TD, 1)
            conv_row = conv_all[mm:mm + 1, :]        # (1, Dp)
            fused = fused + (acc_ref[mm] + hd) * inv_col * conv_row
        fused_ref[...] = fused.astype(fused_ref.dtype)
        out = jnp.dot(fused, w_ref[...], preferred_element_type=jnp.float32)
        out_ref[...] = (out + b_ref[...]).astype(out_ref.dtype)


def mecch_mean_conv_forward(adj, h_src, h_dst, conv, weight, bias, *,
                            tile_dst=512, tile_src=1024, interpret=False):
    """MECCH 'mean' context encoder + 'conv' fusion + output Linear.

    adj    : (M, N_dst, N_src) dense 0/1 adjacency, one slice per metapath
    h_src  : (N_src, D)        source-node features (all src nodes of dst type)
    h_dst  : (N_dst, D)        destination-node features
    conv   : (M, D)            MetapathFusion.conv parameter
    weight : (D_out, D)        nn.Linear weight (PyTorch layout)
    bias   : (D_out,)          nn.Linear bias
    returns (out, fused) == (linear(fused), fused)
    """
    assert tile_dst % 32 == 0 and tile_src % 128 == 0
    M, N_dst, N_src = adj.shape
    D = h_src.shape[-1]
    D_out = weight.shape[0]

    # ---- tile sizes / padding (sublane/lane dense) ---------------------------
    td = min(tile_dst, _round_up(N_dst, 32))
    # Prefer >= 2 dst tiles so the "parallel" axis can shard across v7x's two
    # TensorCores (one-tile grids leave a core idle).
    while td > 32 and pl.cdiv(N_dst, td) < 2:
        td = _round_up(td // 2, 32)
    ts = min(tile_src, _round_up(N_src, 128))
    nd_p = _round_up(N_dst, td)
    ns_p = _round_up(N_src, ts)
    d_p = _round_up(D, 128)
    do_p = _round_up(D_out, 128)

    # deg from the ORIGINAL (unpadded, uncast) adjacency: one fused pass, no
    # padded-f32 intermediate.  Compact (N_dst, M) layout avoids lane-padded
    # (..., 1) HBM/VMEM bloat.
    deg = jnp.sum(adj.astype(jnp.float32), axis=-1)              # (M, N_dst)
    inv_t = jnp.pad((1.0 / (deg + 1.0)).T,                       # (N_dst, M)
                    ((0, nd_p - N_dst), (0, 0)))

    # A is exactly 0/1 -> int8 storage is lossless and minimizes HBM traffic on
    # the dominant stream; the kernel upcasts tiles to bf16 before the dot.
    adj_i8 = jnp.pad(adj.astype(jnp.int8),
                     ((0, 0), (0, nd_p - N_dst), (0, ns_p - N_src)))
    hs_bf = jnp.pad(h_src.astype(jnp.bfloat16),
                    ((0, ns_p - N_src), (0, d_p - D)))
    hd_p = jnp.pad(h_dst.astype(jnp.float32),
                   ((0, nd_p - N_dst), (0, d_p - D)))
    conv_p = jnp.pad(conv.astype(jnp.float32), ((0, 0), (0, d_p - D)))
    w_t = jnp.pad(weight.astype(jnp.float32).T,
                  ((0, d_p - D), (0, do_p - D_out)))
    b_p = jnp.pad(bias.astype(jnp.float32), (0, do_p - D_out)).reshape(1, do_p)

    # grid: (dst tile, src tile, metapath) -- metapath innermost so the h_src
    # block index (k, 0) is unchanged across the M inner steps (no re-DMA).
    grid = (nd_p // td, ns_p // ts, M)

    grid_spec = pltpu.PrefetchScalarGridSpec(
        num_scalar_prefetch=0,
        grid=grid,
        in_specs=[
            # A[m] tile: the dominant stream.  (Only add pl.Buffered(3) here
            # if xprof later shows exposed DMA gaps at these tile sizes.)
            pl.BlockSpec((1, td, ts), lambda i, k, m: (m, i, k)),
            pl.BlockSpec((ts, d_p), lambda i, k, m: (k, 0)),       # h_src tile
            pl.BlockSpec((td, d_p), lambda i, k, m: (i, 0)),       # h_dst
            pl.BlockSpec((td, M), lambda i, k, m: (i, 0)),         # 1/(deg+1)
            pl.BlockSpec((M, d_p), lambda i, k, m: (0, 0)),        # conv
            pl.BlockSpec((d_p, do_p), lambda i, k, m: (0, 0)),     # W^T
            pl.BlockSpec((1, do_p), lambda i, k, m: (0, 0)),       # bias
        ],
        out_specs=(
            pl.BlockSpec((td, do_p), lambda i, k, m: (i, 0)),      # out
            pl.BlockSpec((td, d_p), lambda i, k, m: (i, 0)),       # fused
        ),
        scratch_shapes=[
            pltpu.VMEM((M, td, d_p), jnp.float32),  # raw per-metapath accums
        ],
    )

    out_p, fused_p = pl.pallas_call(
        _mecch_kernel,
        out_shape=(
            jax.ShapeDtypeStruct((nd_p, do_p), jnp.float32),
            jax.ShapeDtypeStruct((nd_p, d_p), jnp.float32),
        ),
        grid_spec=grid_spec,
        compiler_params=pltpu.CompilerParams(
            dimension_semantics=("parallel", "arbitrary", "arbitrary"),
            vmem_limit_bytes=48 * 1024 * 1024,   # v7x-safe (64 MiB/TC physical)
        ),
        interpret=interpret,
    )(adj_i8, hs_bf, hd_p, inv_t, conv_p, w_t, b_p)

    return out_p[:N_dst, :D_out], fused_p[:N_dst, :D]


def mecch_layer_forward(adj_dict, h_src_dict, h_dst_dict, params_dict, **kw):
    """Mirrors MECCHLayer.forward for this config: one fused kernel launch per
    destination node type.  residual=False, layer_norm=False, activation=None
    and eval-mode dropout are identities, so nothing else is applied."""
    out_h_dict, out_embs_dict = {}, {}
    for ntype, adj in adj_dict.items():
        p = params_dict[ntype]
        out_h_dict[ntype], out_embs_dict[ntype] = mecch_mean_conv_forward(
            adj, h_src_dict[ntype], h_dst_dict[ntype],
            p["conv"], p["weight"], p["bias"], **kw)
    return out_h_dict, out_embs_dict


if __name__ == "__main__":
    key = jax.random.PRNGKey(0)
    k_adj, k_hs, k_conv, k_w, k_b = jax.random.split(key, 5)

    M = 3                       # metapaths for this destination node type
    N_src, N_dst = 600, 300     # exercises multiple dst / src tiles
    in_dim, out_dim = 64, 32

    adj = jax.random.bernoulli(
        k_adj, p=0.05, shape=(M, N_dst, N_src)).astype(jnp.float32)
    h_src = jax.random.normal(k_hs, (N_src, in_dim), dtype=jnp.float32)
    h_dst = h_src[:N_dst]       # DGL block convention: dst nodes prefix src
    conv = (jnp.full((M, in_dim), 1.0 / M, dtype=jnp.float32)
            + 0.05 * jax.random.normal(k_conv, (M, in_dim), dtype=jnp.float32))
    weight = jax.random.normal(
        k_w, (out_dim, in_dim), dtype=jnp.float32) / math.sqrt(in_dim)
    bias = 0.01 * jax.random.normal(k_b, (out_dim,), dtype=jnp.float32)

    # ---- pure-JAX reference (same bf16-rounded h_src stream, exact A) -------
    hs_r = h_src.astype(jnp.bfloat16).astype(jnp.float32)
    deg_r = adj.sum(-1)
    h_neigh = jnp.einsum("mns,sd->mnd", adj, hs_r,
                         precision=jax.lax.Precision.HIGHEST)
    h_mp = (h_neigh + h_dst[None]) / (deg_r[..., None] + 1.0)
    fused_ref = jnp.sum(h_mp * conv[:, None, :], axis=0)
    out_ref = jnp.dot(fused_ref, weight.T,
                      precision=jax.lax.Precision.HIGHEST) + bias

    # Two configs: small tiles (3x3x3 grid, exercises all axes) and defaults
    # (exercises the auto dst-tile halving for >=2 parallel tiles).
    for tag, kw in (("small-tiles", dict(tile_dst=128, tile_src=256)),
                    ("default-tiles", dict())):
        out_h_dict, out_embs_dict = mecch_layer_forward(
            {"paper": adj}, {"paper": h_src}, {"paper": h_dst},
            {"paper": {"conv": conv, "weight": weight, "bias": bias}}, **kw)
        out = jax.block_until_ready(out_h_dict["paper"])
        fused = jax.block_until_ready(out_embs_dict["paper"])

        assert out.shape == (N_dst, out_dim) and fused.shape == (N_dst, in_dim)
        assert bool(jnp.allclose(fused, fused_ref, rtol=1e-2, atol=1e-2)), (
            "%s: fused mismatch, max abs diff = %g"
            % (tag, float(jnp.max(jnp.abs(fused - fused_ref)))))
        assert bool(jnp.allclose(out, out_ref, rtol=1e-2, atol=1e-2)), (
            "%s: out mismatch, max abs diff = %g"
            % (tag, float(jnp.max(jnp.abs(out - out_ref)))))

    print("KERNEL_OK")
</pallas_src>

<mosaic_0001>
module attributes {stable_mosaic.version = 11 : i64} {
  func.func @_mecch_kernel(%arg0: i32, %arg1: i32, %arg2: i32, %arg3: memref<1x128x256xi8, #tpu.memory_space<vmem>>, %arg4: memref<256x128xbf16, #tpu.memory_space<vmem>>, %arg5: memref<128x128xf32, #tpu.memory_space<vmem>>, %arg6: memref<128x3xf32, #tpu.memory_space<vmem>>, %arg7: memref<3x128xf32, #tpu.memory_space<vmem>>, %arg8: memref<128x128xf32, #tpu.memory_space<vmem>>, %arg9: memref<1x128xf32, #tpu.memory_space<vmem>>, %arg10: memref<128x128xf32, #tpu.memory_space<vmem>>, %arg11: memref<128x128xf32, #tpu.memory_space<vmem>>, %arg12: memref<3x128x128xf32, #tpu.memory_space<vmem>>) attributes {dimension_semantics = [#tpu.dimension_semantics<parallel>, #tpu.dimension_semantics<arbitrary>, #tpu.dimension_semantics<arbitrary>], iteration_bounds = array<i64: 3, 3, 3>, scalar_prefetch = 0 : i64, scratch_operands = 1 : i64, tpu.core_type = #tpu.core_type<tc>, window_params = [{transform_indices = @transform_0, window_bounds = array<i64: 1, 128, 256>}, {transform_indices = @transform_1, window_bounds = array<i64: 256, 128>}, {transform_indices = @transform_2, window_bounds = array<i64: 128, 128>}, {transform_indices = @transform_3, window_bounds = array<i64: 128, 3>}, {pipeline_mode = #tpu.pipeline_mode<synchronous>, transform_indices = @transform_4, window_bounds = array<i64: 3, 128>}, {pipeline_mode = #tpu.pipeline_mode<synchronous>, transform_indices = @transform_5, window_bounds = array<i64: 128, 128>}, {pipeline_mode = #tpu.pipeline_mode<synchronous>, transform_indices = @transform_6, window_bounds = array<i64: 1, 128>}, {transform_indices = @transform_7, window_bounds = array<i64: 128, 128>}, {transform_indices = @transform_8, window_bounds = array<i64: 128, 128>}]} {
    %c0_i32 = arith.constant 0 : i32
    %0 = arith.cmpi eq, %arg1, %c0_i32 : i32
    %c0_i32_0 = arith.constant 0 : i32
    %1 = arith.cmpi eq, %arg2, %c0_i32_0 : i32
    %2 = arith.andi %0, %1 : i1
    %3 = arith.extui %2 : i1 to i32
    %c0_i32_1 = arith.constant 0 : i32
    %4 = arith.cmpi ne, %3, %c0_i32_1 : i32
    scf.if %4 {
      %cst_12 = arith.constant 0.000000e+00 : f32
      %23 = vector.broadcast %cst_12 : f32 to vector<3x128x128xf32>
      %c0_13 = arith.constant 0 : index
      %c0_14 = arith.constant 0 : index
      %c0_15 = arith.constant 0 : index
      %24 = vector.load %arg12[%c0_13, %c0_14, %c0_15] : memref<3x128x128xf32, #tpu.memory_space<vmem>>, vector<3x128x128xf32>
      tpu.vector_store %arg12[%c0_13, %c0_14, %c0_15], %23 {strides = array<i32>} : memref<3x128x128xf32, #tpu.memory_space<vmem>>, vector<3x128x128xf32>,
    } else {
    }
    %c0 = arith.constant 0 : index
    %c0_2 = arith.constant 0 : index
    %c0_3 = arith.constant 0 : index
    %5 = vector.load %arg3[%c0, %c0_2, %c0_3] : memref<1x128x256xi8, #tpu.memory_space<vmem>>, vector<1x128x256xi8>
    %6 = vector.shape_cast %5 : vector<1x128x256xi8> to vector<128x256xi8>
    %7 = arith.sitofp %6 : vector<128x256xi8> to vector<128x256xbf16>
    %c0_4 = arith.constant 0 : index
    %c0_5 = arith.constant 0 : index
    %8 = vector.load %arg4[%c0_4, %c0_5] : memref<256x128xbf16, #tpu.memory_space<vmem>>, vector<256x128xbf16>
    %cst = arith.constant dense<0.000000e+00> : vector<128x128xf32>
    %9 = tpu.matmul %7, %8, %cst {dimension_numbers = #tpu.dot_dimension_numbers<[1], [0], [0], [1], [0, 0, 1, 1], [], []>} : vector<128x256xbf16>, vector<256x128xbf16>, vector<128x128xf32> -> vector<128x128xf32>
    %10 = arith.index_cast %arg2 : i32 to index
    %c0_6 = arith.constant 0 : index
    %c0_7 = arith.constant 0 : index
    %11 = vector.load %arg12[%10, %c0_6, %c0_7] : memref<3x128x128xf32, #tpu.memory_space<vmem>>, vector<1x128x128xf32>
    %12 = vector.shape_cast %11 : vector<1x128x128xf32> to vector<128x128xf32>
    %13 = arith.addf %12, %9 : vector<128x128xf32>
    %14 = arith.index_cast %arg2 : i32 to index
    %c0_8 = arith.constant 0 : index
    %c0_9 = arith.constant 0 : index
    %15 = vector.load %arg12[%14, %c0_8, %c0_9] : memref<3x128x128xf32, #tpu.memory_space<vmem>>, vector<1x128x128xf32>
    %16 = vector.shape_cast %15 : vector<1x128x128xf32> to vector<128x128xf32>
    %17 = vector.shape_cast %13 : vector<128x128xf32> to vector<1x128x128xf32>
    tpu.vector_store %arg12[%14, %c0_8, %c0_9], %17 {strides = array<i32>} : memref<3x128x128xf32, #tpu.memory_space<vmem>>, vector<1x128x128xf32>,
    %c2_i32 = arith.constant 2 : i32
    %18 = arith.cmpi eq, %arg1, %c2_i32 : i32
    %c2_i32_10 = arith.constant 2 : i32
    %19 = arith.cmpi eq, %arg2, %c2_i32_10 : i32
    %20 = arith.andi %18, %19 : i1
    %21 = arith.extui %20 : i1 to i32
    %c0_i32_11 = arith.constant 0 : i32
    %22 = arith.cmpi ne, %21, %c0_i32_11 : i32
    scf.if %22 {
      %c0_12 = arith.constant 0 : index
      %c0_13 = arith.constant 0 : index
      %23 = vector.load %arg5[%c0_12, %c0_13] : memref<128x128xf32, #tpu.memory_space<vmem>>, vector<128x128xf32>
      %c0_14 = arith.constant 0 : index
      %c0_15 = arith.constant 0 : index
      %24 = vector.load %arg6[%c0_14, %c0_15] : memref<128x3xf32, #tpu.memory_space<vmem>>, vector<128x3xf32>
      %c0_16 = arith.constant 0 : index
      %c0_17 = arith.constant 0 : index
      %25 = vector.load %arg7[%c0_16, %c0_17] : memref<3x128xf32, #tpu.memory_space<vmem>>, vector<3x128xf32>
      %cst_18 = arith.constant 0.000000e+00 : f32
      %26 = vector.broadcast %cst_18 : f32 to vector<128x128xf32>
      %27 = vector.extract_strided_slice %24 {offsets = [0, 0], sizes = [128, 1], strides = [1, 1]} : vector<128x3xf32> to vector<128x1xf32>
      %28 = vector.extract_strided_slice %25 {offsets = [0, 0], sizes = [1, 128], strides = [1, 1]} : vector<3x128xf32> to vector<1x128xf32>
      %c0_19 = arith.constant 0 : index
      %c0_20 = arith.constant 0 : index
      %c0_21 = arith.constant 0 : index
      %29 = vector.load %arg12[%c0_19, %c0_20, %c0_21] : memref<3x128x128xf32, #tpu.memory_space<vmem>>, vector<1x128x128xf32>
      %30 = vector.shape_cast %29 : vector<1x128x128xf32> to vector<128x128xf32>
      %31 = arith.addf %30, %23 : vector<128x128xf32>
      %32 = vector.broadcast %27 : vector<128x1xf32> to vector<128x128xf32>
      %33 = arith.mulf %31, %32 : vector<128x128xf32>
      %34 = vector.broadcast %28 : vector<1x128xf32> to vector<128x128xf32>
      %35 = arith.mulf %33, %34 : vector<128x128xf32>
      %36 = arith.addf %26, %35 : vector<128x128xf32>
      %37 = vector.extract_strided_slice %24 {offsets = [0, 1], sizes = [128, 1], strides = [1, 1]} : vector<128x3xf32> to vector<128x1xf32>
      %38 = vector.extract_strided_slice %25 {offsets = [1, 0], sizes = [1, 128], strides = [1, 1]} : vector<3x128xf32> to vector<1x128xf32>
      %c1 = arith.constant 1 : index
      %c0_22 = arith.constant 0 : index
      %c0_23 = arith.constant 0 : index
      %39 = vector.load %arg12[%c1, %c0_22, %c0_23] : memref<3x128x128xf32, #tpu.memory_space<vmem>>, vector<1x128x128xf32>
      %40 = vector.shape_cast %39 : vector<1x128x128xf32> to vector<128x128xf32>
      %41 = arith.addf %40, %23 : vector<128x128xf32>
      %42 = vector.broadcast %37 : vector<128x1xf32> to vector<128x128xf32>
      %43 = arith.mulf %41, %42 : vector<128x128xf32>
      %44 = vector.broadcast %38 : vector<1x128xf32> to vector<128x128xf32>
      %45 = arith.mulf %43, %44 : vector<128x128xf32>
      %46 = arith.addf %36, %45 : vector<128x128xf32>
      %47 = vector.extract_strided_slice %24 {offsets = [0, 2], sizes = [128, 1], strides = [1, 1]} : vector<128x3xf32> to vector<128x1xf32>
      %48 = vector.extract_strided_slice %25 {offsets = [2, 0], sizes = [1, 128], strides = [1, 1]} : vector<3x128xf32> to vector<1x128xf32>
      %c2 = arith.constant 2 : index
      %c0_24 = arith.constant 0 : index
      %c0_25 = arith.constant 0 : index
      %49 = vector.load %arg12[%c2, %c0_24, %c0_25] : memref<3x128x128xf32, #tpu.memory_space<vmem>>, vector<1x128x128xf32>
      %50 = vector.shape_cast %49 : vector<1x128x128xf32> to vector<128x128xf32>
      %51 = arith.addf %50, %23 : vector<128x128xf32>
      %52 = vector.broadcast %47 : vector<128x1xf32> to vector<128x128xf32>
      %53 = arith.mulf %51, %52 : vector<128x128xf32>
      %54 = vector.broadcast %48 : vector<1x128xf32> to vector<128x128xf32>
      %55 = arith.mulf %53, %54 : vector<128x128xf32>
      %56 = arith.addf %46, %55 : vector<128x128xf32>
      %c0_26 = arith.constant 0 : index
      %c0_27 = arith.constant 0 : index
      %57 = vector.load %arg11[%c0_26, %c0_27] : memref<128x128xf32, #tpu.memory_space<vmem>>, vector<128x128xf32>
      tpu.vector_store %arg11[%c0_26, %c0_27], %56 {strides = array<i32>} : memref<128x128xf32, #tpu.memory_space<vmem>>, vector<128x128xf32>,
      %c0_28 = arith.constant 0 : index
      %c0_29 = arith.constant 0 : index
      %58 = vector.load %arg8[%c0_28, %c0_29] : memref<128x128xf32, #tpu.memory_space<vmem>>, vector<128x128xf32>
      %cst_30 = arith.constant dense<0.000000e+00> : vector<128x128xf32>
      %59 = tpu.matmul %56, %58, %cst_30 {dimension_numbers = #tpu.dot_dimension_numbers<[1], [0], [0], [1], [0, 0, 1, 1], [], []>} : vector<128x128xf32>, vector<128x128xf32>, vector<128x128xf32> -> vector<128x128xf32>
      %c0_31 = arith.constant 0 : index
      %c0_32 = arith.constant 0 : index
      %60 = vector.load %arg9[%c0_31, %c0_32] : memref<1x128xf32, #tpu.memory_space<vmem>>, vector<1x128xf32>
      %61 = vector.broadcast %60 : vector<1x128xf32> to vector<128x128xf32>
      %62 = arith.addf %59, %61 : vector<128x128xf32>
      %c0_33 = arith.constant 0 : index
      %c0_34 = arith.constant 0 : index
      %63 = vector.load %arg10[%c0_33, %c0_34] : memref<128x128xf32, #tpu.memory_space<vmem>>, vector<128x128xf32>
      tpu.vector_store %arg10[%c0_33, %c0_34], %62 {strides = array<i32>} : memref<128x128xf32, #tpu.memory_space<vmem>>, vector<128x128xf32>,
    } else {
    }
    return
  }
  func.func @transform_0(%arg0: i32, %arg1: i32, %arg2: i32) -> (i32, i32, i32) {
    %c0_i32 = arith.constant 0 : i32
    return %arg2, %arg0, %arg1 : i32, i32, i32
  }
  func.func @transform_1(%arg0: i32, %arg1: i32, %arg2: i32) -> (i32, i32) {
    %c0_i32 = arith.constant 0 : i32
    %c0_i32_0 = arith.constant 0 : i32
    return %arg1, %c0_i32 : i32, i32
  }
  func.func @transform_2(%arg0: i32, %arg1: i32, %arg2: i32) -> (i32, i32) {
    %c0_i32 = arith.constant 0 : i32
    %c0_i32_0 = arith.constant 0 : i32
    return %arg0, %c0_i32 : i32, i32
  }
  func.func @transform_3(%arg0: i32, %arg1: i32, %arg2: i32) -> (i32, i32) {
    %c0_i32 = arith.constant 0 : i32
    %c0_i32_0 = arith.constant 0 : i32
    return %arg0, %c0_i32 : i32, i32
  }
  func.func @transform_4(%arg0: i32, %arg1: i32, %arg2: i32) -> (i32, i32) {
    %c0_i32 = arith.constant 0 : i32
    %c0_i32_0 = arith.constant 0 : i32
    %c0_i32_1 = arith.constant 0 : i32
    return %c0_i32, %c0_i32_0 : i32, i32
  }
  func.func @transform_5(%arg0: i32, %arg1: i32, %arg2: i32) -> (i32, i32) {
    %c0_i32 = arith.constant 0 : i32
    %c0_i32_0 = arith.constant 0 : i32
    %c0_i32_1 = arith.constant 0 : i32
    return %c0_i32, %c0_i32_0 : i32, i32
  }
  func.func @transform_6(%arg0: i32, %arg1: i32, %arg2: i32) -> (i32, i32) {
    %c0_i32 = arith.constant 0 : i32
    %c0_i32_0 = arith.constant 0 : i32
    %c0_i32_1 = arith.constant 0 : i32
    return %c0_i32, %c0_i32_0 : i32, i32
  }
  func.func @transform_7(%arg0: i32, %arg1: i32, %arg2: i32) -> (i32, i32) {
    %c0_i32 = arith.constant 0 : i32
    %c0_i32_0 = arith.constant 0 : i32
    return %arg0, %c0_i32 : i32, i32
  }
  func.func @transform_8(%arg0: i32, %arg1: i32, %arg2: i32) -> (i32, i32) {
    %c0_i32 = arith.constant 0 : i32
    %c0_i32_0 = arith.constant 0 : i32
    return %arg0, %c0_i32 : i32, i32
  }
}

</mosaic_0001>

<bundles_post_ra>
// kernel: tpu_custom_call.1
= control target key start
LH: loop header
LB: loop body
LE: loop exit
PB: predicated region body
PF: predicated region fallthrough
CT: control target
= control target key end

     0   :  { %s3133_s0 = inlined_call_operand.hbm [shape: s8[3,384,768], index: 0, kind: input, shape index: {}]   ;;  %s3134_s1 = inlined_call_operand.vmem [shape: bf16[768,128], index: 1, kind: input, shape index: {}]   ;;  %s3135_s2 = inlined_call_operand.hbm [shape: f32[384,128], index: 2, kind: input, shape index: {}]   ;;  %s3136_s3 = inlined_call_operand.vmem [shape: f32[384,3], index: 3, kind: input, shape index: {}]   ;;  %s3137_s4 = inlined_call_operand.vmem [shape: f32[3,128], index: 4, kind: input, shape index: {}]   ;;  %s3138_s5 = inlined_call_operand.hbm [shape: f32[128,128], index: 5, kind: input, shape index: {}]   ;;  %s3139_s6 = inlined_call_operand.vmem [shape: f32[1,128], index: 6, kind: input, shape index: {}]   ;;  %s3140_s7 = inlined_call_operand.hbm [shape: f32[384,128], index: 7, kind: output, shape index: {0}]   ;;  %s3141_s8 = inlined_call_operand.hbm [shape: f32[384,128], index: 8, kind: output, shape index: {1}]  }
   0x1   :  { %3163 = sst [smem:[#allocation29_spill]] %s3134_s1 }
   0x2   :  { %3164 = sst [smem:[#allocation30_spill]] %s3136_s3 }
   0x3   :  { %3165 = sst [smem:[#allocation31_spill]] %s3137_s4 }
   0x4   :  { %3166 = sst [smem:[#allocation32_spill]] %s3138_s5 }
   0x5   :  { %3167 = sst [smem:[#allocation33_spill]] %s3139_s6 }
   0x6   :  { %3168 = sst [smem:[#allocation34_spill]] %s3140_s7 }
   0x7   :  { %3169 = sst [smem:[#allocation35_spill]] %s3141_s8 }
   0x8   :  { %14 = vsyncpa [#allocation4], 0 }
   0x9   :  { %16 = vsyncpa [#allocation4 + $0x1], 0 }
   0xa   :  { %17 = vsyncpa [#allocation7], 0 }
   0xb   :  { %19 = vsyncpa [#allocation7 + $0x1], 0 }
   0xc   :  { %20 = vsyncpa [#allocation5], 0 }
   0xd   :  { %22 = vsyncpa [#allocation5 + $0x1], 0 }
   0xe   :  { %23 = vsyncpa [#allocation11], 0 }
   0xf   :  { %25 = vsyncpa [#allocation11 + $0x1], 0  ;;  %s2502_s27 = smov 0   ;;  %s2504_s28 = smov 0  }
  0x10   :  { %s2506_s29 = smov 0   ;;  %s2508_s30 = smov 0  }
  0x11   :  { %s2510_s9 = smov 0   ;;  %s2512_s10 = smov 0  }
  0x12   :  { %s2514_s11 = smov 0   ;;  %s2516_s12 = smov 0  }
  0x13   :  { %s2518_s13 = smov 0   ;;  %s2520_s14 = smov 0  }
  0x14   :  { %s2522_s15 = smov 0   ;;  %s2524_s16 = smov 0  }
  0x15   :  { %s2526_s17 = smov 0  }
  0x16 LB: > { %3170 = sst [smem:[#allocation17_spill]] %s2391_s27  ;;  %s2566_s18 = sadd.s32 4294967295, %s2439_s17   ;;  %s2439_s17 = sphi %s2526_s17, %s31_s17   ;;  %s2435_s16 = sphi %s2524_s16, %s3235_s16   ;;  %s2431_s15 = sphi %s2522_s15, %s3223_s15   ;;  %s2427_s14 = sphi %s2520_s14, %s3234_s14   ;;  %s2423_s13 = sphi %s2518_s13, %s3233_s13   ;;  %s2419_s12 = sphi %s2516_s12, %s3221_s12   ;;  %s2415_s11 = sphi %s2514_s11, %s3232_s11   ;;  %s2411_s10 = sphi %s2512_s10, %s3231_s10   ;;  %s2407_s9 = sphi %s2510_s9, %s3230_s9   ;;  %s2403_s30 = sphi %s2508_s30, %s3229_s30   ;;  %s2399_s29 = sphi %s2506_s29, %s3228_s29   ;;  %s2395_s28 = sphi %s2504_s28, %s3227_s28   ;;  %s2391_s27 = sphi %s2502_s27, %s3226_s27  }
  0x17   : > { %3171 = sst [smem:[#allocation18_spill]] %s2407_s9  ;;  %s1742_s19 = sadd.s32 4294967294, %s2439_s17  }
  0x18   : > { %3172 = sst [smem:[#allocation19_spill]] %s2415_s11  ;;  %p74_p0 = scmp.ne.s32.totalorder %s2407_s9, %s2403_s30 }
  0x19   : > { %3173 = sst [smem:[#allocation20_spill]] %s2419_s12  ;;  %p3161_p1 = scmp.eq.s32.totalorder %s2566_s18, 0 }
  0x1a   : > { %3174 = sst [smem:[#allocation21_spill]] %s2423_s13  ;;  %p126_p2 = scmp.ne.s32.totalorder %s2395_s28, %s2391_s27 }
  0x1b   : > { %3175 = sst [smem:[#allocation22_spill]] %s2431_s15  ;;  %p2576_p4 = por %p3161_p1, %p74_p0 }
  0x1c   : > { %p245_p5 = scmp.eq.s32.totalorder %s1742_s19, 26  ;;  %p2582_p6 = por %p126_p2, %p3161_p1 }
  0x1d   : > { %s3176_s20 = scalar_select %p2576_p4, 1, 0 }
  0x1e   : > { %s3178_s21 = scalar_select %p2582_p6, 1, 0 }
  0x1f   : > { %3177 = sst [smem:[#allocation23_spill]] %s3176_s20  ;;  %p1743_p7 = scmp.ge.s32.totalorder %s2439_s17, 1 }
  0x20   : > { %3179 = sst [smem:[#allocation24_spill]] %s3178_s21  ;;  %p2587_p8 = por %p245_p5, %p126_p2 }
  0x21   : > { %p278_p9 = scmp.lt.s32.totalorder %s2439_s17, 28  ;;  %s2441_s24 = smov [#allocation8]  }
  0x22   : > { %s3180_s22 = scalar_select %p2587_p8, 1, 0 }
  0x23   : > { %p2592_p10 = pnand %p1743_p7, %p278_p9  ;;  %s293_s25 = sshll.u32 %s2441_s24, 4  ;;  %s294_s25 = int_to_ptr.vmem [resolvable:$true] %s293_s25 }
  0x24   : > { %3181 = sst [smem:[#allocation25_spill]] %s3180_s22  ;;  %s2194_s26 = scalar_lea.vmem %s294_s25, 2048 }
  0x25   : > { %p2007_p11 = pneg %p2592_p10  ;;  %p2195_p0 = scmp.ne.s32.totalorder %s294_s25, %s2194_s26 }
  0x26   : > { %p2202_p3 = scmp.lt.s32.totalorder %s294_s25, %s294_s25  ;;  %p2203_p8 = scmp.lt.s32.totalorder %s2194_s26, %s2194_s26 }
  0x27   : > { %p2008_p12 = pnand %p2007_p11, %p3161_p1 }
  0x28   : > { %p2204_p6 = por %p2203_p8, %p2202_p3 }
  0x29   : > { %p2185_p13 = pneg %p2008_p12 }
  0x2b   : > { %p2197_p2 = pnand %p2195_p0, %p2185_p13 }
  0x2d   : > { %p2198_p5 = pneg %p2197_p2 }
  0x2f   : > { %p2205_p7 = pnand %p2204_p6, %p2198_p5 }
  0x31   : > { %2208 = shalt.err (!%p2205_p7)
}
  0x32   : > { %s3147_s30 = smov 128   ;;  %s3148_s19 = smov 8  }
  0x33   : > { %s3183_s5 = sld [smem:[#allocation32_spill]]  ;;  %s43_s22 = sadd.s32 1, %s2427_s14 }
  0x34   : > { %p44_p3 = scmp.ge.s32.totalorder %s43_s22, 3  ;;  %s46_s27 = sadd.s32 1, %s2431_s15 }
  0x35   : > { %s50_s8 = sadd.s32 1, %s2435_s16  ;;  %p68_p6 = scmp.ne.s32.totalorder %s2411_s10, %s2407_s9 }
  0x36   : > { %s3237_s22 = smov (%p44_p3, %s43_s22), 0  ;;  %s3239_s27 = smov (!%p44_p3, %s46_s27), %s2431_s15 }
  0x37   : > { %3184 = sst [smem:[#allocation26_spill]] %s3237_s22  ;;  %s54_s6 = ssub.s32 %s2427_s14, %s3237_s22 }
  0x38   : > { %p48_p8 = scmp.ge.s32.totalorder %s3239_s27, 3  ;;  %p3162_p9 = scmp.eq.s32.totalorder %s2439_s17, 0 }
  0x39   : > { %2010 = dma.hbm_to_vmem [thread:$0]  (!%p2008_p12), %s3183_s5, 2048, %s294_s25, [#allocation7], %s3147_s30, %s3147_s30, %s3148_s19  }
  0x3a   : > { %p2026_p11 = scmp.lt.s32.totalorder %s2439_s17, 27  ;;  %s310_s25 = sand.u32 1, %s2411_s10  }
  0x3b   : > { %s3241_s27 = smov (%p48_p8, %s3239_s27), 0  ;;  %s3243_s8 = smov (!%p48_p8, %s50_s8), %s2435_s16 }
  0x3c   : > { %3185 = sst [smem:[#allocation27_spill]] %s3241_s27  ;;  %s57_s24 = ssub.s32 %s2431_s15, %s3241_s27 }
  0x3d   : > { %p2627_p12 = por %p3162_p9, %p68_p6  ;;  %p52_p13 = scmp.ge.s32.totalorder %s3243_s8, 3 }
  0x3e   : > { %s1746_s30 = sshll.u32 %s310_s25, 6  ;;  %s1748_s19 = sshll.u32 %s2431_s15, 1 }
  0x3f   : > { %s3245_s8 = smov (%p52_p13, %s3243_s8), 0  ;;  %s1993_s7 = smul.u32 24, %s2435_s16 }
  0x40   : > { %3187 = sst [smem:[#allocation28_spill]] %s3245_s8  ;;  %s2637_s5 = ssub.s32 %s2435_s16, %s3245_s8 }
  0x41   : > { %s1994_s27 = smul.u32 72, %s2427_s14  ;;  %s56_s22 = sor.u32 %s2637_s5, %s54_s6 }
  0x42   : > { %p111_p0 = scmp.eq.s32.totalorder %s2637_s5, 0  ;;  %s58_s4 = sor.u32 %s57_s24, %s56_s22 }
  0x43   : > { %s321_s3 = sadd.s32 %s1993_s7, %s1748_s19  ;;  %p59_p2 = scmp.eq.s32.totalorder %s58_s4, 0 }
  0x44   : > { %s323_s1 = sadd.s32 %s1994_s27, %s321_s3  ;;  %s314_s13 = scalar_lea.vmem [#allocation3], %s1746_s30 }
  0x45   : > { %s1750_s11 = sshll.u32 %s323_s1, 7  ;;  %s326_s15 = sshll.u32 %s314_s13, 4  ;;  %s327_s15 = int_to_ptr.vmem [resolvable:$true] %s326_s15 }
  0x46   : > { %s3188_s12 = sadd.s32 1, %s2411_s10  ;;  %s325_s8 = scalar_lea.hbm %s3133_s0, %s1750_s11 }
  0x47   : > { %s2645_s21 = scalar_select %p59_p2, %s2411_s10, %s3188_s12  }
  0x48   : > { %p2654_p5 = pnand %p2026_p11, %p2627_p12  ;;  %s311_s4 = scalar_lea.sflag [#allocation4], %s310_s25 }
  0x49   : > { %s2222_s1 = scalar_lea.vmem %s327_s15, 1024  ;;  %s2444_s3 = smov [#allocation3]  }
  0x4a   : > { %p2211_p7 = pneg %p2654_p5  ;;  %p2223_p3 = scmp.ne.s32.totalorder %s327_s15, %s2222_s1 }
  0x4b   : > { %s2227_s7 = sshll.u32 %s2444_s3, 4  ;;  %s2228_s7 = int_to_ptr.vmem [resolvable:$false] %s2227_s7 }
  0x4c   : > { %p2225_p6 = pnand %p2223_p3, %p2211_p7  ;;  %s2229_s27 = scalar_lea.vmem %s2228_s7, 2048 }
  0x4d   : > { %p2230_p13 = scmp.lt.s32.totalorder %s327_s15, %s2228_s7  ;;  %p2231_p2 = scmp.lt.s32.totalorder %s2229_s27, %s2222_s1 }
  0x4e   : > { %p2226_p8 = pneg %p2225_p6 }
  0x4f   : > { %p2232_p1 = por %p2231_p2, %p2230_p13 }
  0x51   : > { %p2233_p9 = pnand %p2232_p1, %p2226_p8 }
  0x53   : > { %2236 = shalt.err (!%p2233_p9)
}
  0x54   : > { %s2445_s9 = smov 768   ;;  %s2446_s11 = smov 256  }
  0x55   : > { %s2447_s12 = smov 16   ;;  %s345_s13 = sand.u32 1, %s2439_s17  }
  0x56   : > { %2014 = dma.hbm_to_vmem [thread:$0]  (!%p2654_p5), %s325_s8, 1024, %s327_s15, %s311_s4, %s2445_s9, %s2446_s11, %s2447_s12  }
  0x57   : > { %s113_s20 = sadd.s32 1, %s2399_s29  ;;  %p120_p1 = scmp.ne.s32.totalorder %s2399_s29, %s2395_s28 }
  0x58   : > { %s2669_s22 = scalar_select %p111_p0, %s2399_s29, %s113_s20  }
  0x59   : > { %p3190_p9 = scmp.eq.s32.totalorder %s2439_s17, 0  ;;  %p3191_p7 = scmp.eq.s32.totalorder %s2566_s18, 26 }
  0x5a   : > { %s347_s19 = sand.u32 1, %s2399_s29   ;;  %s1790_s24 = sshll.u32 %s2435_s16, 11 }
  0x5b   : > { %p122_p12 = por %p120_p1, %p3190_p9  ;;  %p2675_p3 = por %p3191_p7, %p120_p1 }
  0x5c   : > { %s1751_s25 = sshll.u32 %s347_s19, 7  ;;  %s355_s8 = scalar_lea.hbm %s3135_s2, %s1790_s24 }
  0x5d   : > { %s349_s15 = scalar_lea.vmem [#allocation6], %s1751_s25  ;;  %p2686_p5 = pnand %p2026_p11, %p122_p12 }
  0x5e   : > { %s356_s6 = sshll.u32 %s349_s15, 4  ;;  %s346_s4 = scalar_lea.sflag [#allocation7], %s345_s13  ;;  %s357_s6 = int_to_ptr.vmem [resolvable:$true] %s356_s6 }
  0x5f   : > { %p2239_p0 = pneg %p2686_p5  ;;  %s2250_s3 = scalar_lea.vmem %s357_s6, 2048 }
  0x60   : > { %p2251_p6 = scmp.ne.s32.totalorder %s357_s6, %s2250_s3  ;;  %s2448_s7 = smov [#allocation6]  }
  0x61   : > { %s2255_s27 = sshll.u32 %s2448_s7, 4  ;;  %s2256_s27 = int_to_ptr.vmem [resolvable:$false] %s2255_s27 }
  0x62   : > { %p2253_p8 = pnand %p2251_p6, %p2239_p0  ;;  %s2257_s9 = scalar_lea.vmem %s2256_s27, 4096 }
  0x63   : > { %p2258_p2 = scmp.lt.s32.totalorder %s357_s6, %s2256_s27  ;;  %p2259_p1 = scmp.lt.s32.totalorder %s2257_s9, %s2250_s3 }
  0x64   : > { %p2254_p13 = pneg %p2253_p8 }
  0x65   : > { %p2260_p9 = por %p2259_p1, %p2258_p2 }
  0x67   : > { %p2261_p11 = pnand %p2260_p9, %p2254_p13 }
  0x69   : > { %2264 = shalt.err (!%p2261_p11)
}
  0x6a   : > { %s3194_s11 = smov 8   ;;  %s3195_s12 = smov 128  }
  0x6b   : > { %2017 = dma.hbm_to_vmem [thread:$0]  (!%p2686_p5), %s355_s8, 2048, %s357_s6, %s346_s4, %s3195_s12, %s3195_s12, %s3194_s11  }
  0x6c   : > { %377 = sbr.rel (%p2592_p10) target bundleno = 942 (0x3ae), region = 48  ;;  %s3196_s13 = sld [smem:[#allocation18_spill]] (!%p2592_p10) }
  0x72   : > { %s379_s19 = sand.u32 1, %s3196_s13  }
  0x73   : > { %s1755_s25 = sshll.u32 %s379_s19, 6  ;;  %s380_s24 = scalar_lea.sflag [#allocation4], %s379_s19 }
  0x74   : > { %s2700_s26 = scalar_lea.vmem [#allocation3], %s1755_s25 }
  0x75   : > { %2370 = dma.done.wait (%p2576_p4), %s380_s24, 1024  }
  0x76   : > { %2372 = vsyncadd (%p2576_p4), %s380_s24, 4294966272  ;;  %s3198_s1 = sld [smem:[#allocation24_spill]]  ;;  %s388_s15 = sand.u32 1, %s2566_s18  }
  0x77   : > { %s2708_s8 = sand.u32 1, %s2395_s28   ;;  %s389_s6 = scalar_lea.sflag [#allocation7], %s388_s15 }
  0x78   : > { %s1756_s23 = sshll.u32 %s2708_s8, 7 }
  0x79   : > { %s2711_s5 = scalar_lea.vmem [#allocation6], %s1756_s23 }
  0x7c   : > { %p3199_p10 = scmp.ne.s32.totalorder %s3198_s1, 0 }
  0x7e   : > { %2374 = dma.done.wait (%p3199_p10), %s389_s6, 2048  }
  0x7f   : > { %2376 = vsyncadd (%p3199_p10), %s389_s6, 4294965248  ;;  %p3200_p12 = scmp.eq.s32.totalorder %s2566_s18, 0 }
  0x81   : > { %2378 = dma.done.wait (%p3200_p12), [#allocation7], 2048   ;;  %p3201_p4 = pmov %p3200_p12 }
  0x82   : > { %s3202_s4 = sld [smem:[#allocation20_spill]]  ;;  %s2735_s6 = scalar_lea.vmem [#allocation9], %s1756_s23 }
  0x83   : > { %2380 = vsyncadd (%p3201_p4), [#allocation7], 4294965248  ;;  %s3203_s3 = sld [smem:[#allocation21_spill]] }
  0x84   : > { %s3204_s7 = sld [smem:[#allocation19_spill]] }
  0x85   : > { %s3205_s20 = sld [smem:[#allocation29_spill]] }
  0x86   : > { %s3206_s1 = sld [smem:[#allocation30_spill]] }
  0x88   : > { %s1760_s27 = sshll.u32 %s3202_s4, 5  ;;  %p467_p0 = scmp.eq.s32.totalorder %s3202_s4, 0 }
  0x89   : > { %s1762_s9 = sshll.u32 %s3203_s3, 4  ;;  %p452_p7 = scmp.lt.s32.totalorder %s1760_s27, 95 }
  0x8a   : > { %p459_p5 = scmp.lt.s32.totalorder %s1762_s9, 47  ;;  %p468_p6 = scmp.eq.s32.totalorder %s3204_s7, 0 }
  0x8b   : > { %s3247_s27 = smov (!%p452_p7, %s1760_s27), 95  ;;  %s2737_s3 = scalar_lea.vmem [#allocation10], %s1756_s23 }
  0x8c   : > { %s3249_s9 = smov (!%p459_p5, %s1762_s9), 47  ;;  %s1761_s11 = sshll.u32 %s3247_s27, 2 }
  0x8d   : > { %p469_p8 = pnand %p468_p6, %p467_p0  ;;  %s2728_s19 = scalar_lea.vmem %s3205_s20, %s1761_s11 }
  0x8e   : > { %s1763_s18 = sshll.u32 %s3249_s9, 3 }
  0x8f   : > { %s2733_s15 = scalar_lea.vmem %s3206_s1, %s1763_s18  ;;  %472 = sbr.rel (%p469_p8) target bundleno = 173 (0xad), region = 64 }
  0x94   : > { %v2449_v0 = vmov 0.0  }
  0x95   : > { %473 = vst [vmem:[#allocation2] sm:$0xff] %v2449_v0  ;;  %474 = vst [vmem:[#allocation2 + $0x8] sm:$0xff] %v2449_v0 }
  0x96   : > { %475 = vst [vmem:[#allocation2 + $0x10] sm:$0xff] %v2449_v0  ;;  %476 = vst [vmem:[#allocation2 + $0x18] sm:$0xff] %v2449_v0 }
  0x97   : > { %477 = vst [vmem:[#allocation2 + $0x20] sm:$0xff] %v2449_v0  ;;  %478 = vst [vmem:[#allocation2 + $0x28] sm:$0xff] %v2449_v0 }
  0x98   : > { %479 = vst [vmem:[#allocation2 + $0x30] sm:$0xff] %v2449_v0  ;;  %480 = vst [vmem:[#allocation2 + $0x38] sm:$0xff] %v2449_v0 }
  0x99   : > { %481 = vst [vmem:[#allocation2 + $0x40] sm:$0xff] %v2449_v0  ;;  %482 = vst [vmem:[#allocation2 + $0x48] sm:$0xff] %v2449_v0 }
  0x9a   : > { %483 = vst [vmem:[#allocation2 + $0x50] sm:$0xff] %v2449_v0  ;;  %484 = vst [vmem:[#allocation2 + $0x58] sm:$0xff] %v2449_v0 }
  0x9b   : > { %485 = vst [vmem:[#allocation2 + $0x60] sm:$0xff] %v2449_v0  ;;  %486 = vst [vmem:[#allocation2 + $0x68] sm:$0xff] %v2449_v0 }
  0x9c   : > { %487 = vst [vmem:[#allocation2 + $0x70] sm:$0xff] %v2449_v0  ;;  %488 = vst [vmem:[#allocation2 + $0x78] sm:$0xff] %v2449_v0 }
  0x9d   : > { %489 = vst [vmem:[#allocation2 + $0x80] sm:$0xff] %v2449_v0  ;;  %490 = vst [vmem:[#allocation2 + $0x88] sm:$0xff] %v2449_v0 }
  0x9e   : > { %491 = vst [vmem:[#allocation2 + $0x90] sm:$0xff] %v2449_v0  ;;  %492 = vst [vmem:[#allocation2 + $0x98] sm:$0xff] %v2449_v0 }
  0x9f   : > { %493 = vst [vmem:[#allocation2 + $0xa0] sm:$0xff] %v2449_v0  ;;  %494 = vst [vmem:[#allocation2 + $0xa8] sm:$0xff] %v2449_v0 }
  0xa0   : > { %495 = vst [vmem:[#allocation2 + $0xb0] sm:$0xff] %v2449_v0  ;;  %496 = vst [vmem:[#allocation2 + $0xb8] sm:$0xff] %v2449_v0 }
  0xa1   : > { %497 = vst [vmem:[#allocation2 + $0xc0] sm:$0xff] %v2449_v0  ;;  %498 = vst [vmem:[#allocation2 + $0xc8] sm:$0xff] %v2449_v0 }
  0xa2   : > { %499 = vst [vmem:[#allocation2 + $0xd0] sm:$0xff] %v2449_v0  ;;  %500 = vst [vmem:[#allocation2 + $0xd8] sm:$0xff] %v2449_v0 }
  0xa3   : > { %501 = vst [vmem:[#allocation2 + $0xe0] sm:$0xff] %v2449_v0  ;;  %502 = vst [vmem:[#allocation2 + $0xe8] sm:$0xff] %v2449_v0 }
  0xa4   : > { %503 = vst [vmem:[#allocation2 + $0xf0] sm:$0xff] %v2449_v0  ;;  %504 = vst [vmem:[#allocation2 + $0xf8] sm:$0xff] %v2449_v0 }
  0xa5   : > { %505 = vst [vmem:[#allocation2 + $0x100] sm:$0xff] %v2449_v0  ;;  %506 = vst [vmem:[#allocation2 + $0x108] sm:$0xff] %v2449_v0 }
  0xa6   : > { %507 = vst [vmem:[#allocation2 + $0x110] sm:$0xff] %v2449_v0  ;;  %508 = vst [vmem:[#allocation2 + $0x118] sm:$0xff] %v2449_v0 }
  0xa7   : > { %509 = vst [vmem:[#allocation2 + $0x120] sm:$0xff] %v2449_v0  ;;  %510 = vst [vmem:[#allocation2 + $0x128] sm:$0xff] %v2449_v0 }
  0xa8   : > { %511 = vst [vmem:[#allocation2 + $0x130] sm:$0xff] %v2449_v0  ;;  %512 = vst [vmem:[#allocation2 + $0x138] sm:$0xff] %v2449_v0 }
  0xa9   : > { %513 = vst [vmem:[#allocation2 + $0x140] sm:$0xff] %v2449_v0  ;;  %514 = vst [vmem:[#allocation2 + $0x148] sm:$0xff] %v2449_v0 }
  0xaa   : > { %515 = vst [vmem:[#allocation2 + $0x150] sm:$0xff] %v2449_v0  ;;  %516 = vst [vmem:[#allocation2 + $0x158] sm:$0xff] %v2449_v0 }
  0xab   : > { %517 = vst [vmem:[#allocation2 + $0x160] sm:$0xff] %v2449_v0  ;;  %518 = vst [vmem:[#allocation2 + $0x168] sm:$0xff] %v2449_v0 }
  0xac   : > { %519 = vst [vmem:[#allocation2 + $0x170] sm:$0xff] %v2449_v0  ;;  %520 = vst [vmem:[#allocation2 + $0x178] sm:$0xff] %v2449_v0 }
  0xad PF: > { %v2145_v1 = vld [vmem:[%s2728_s19 + $0x78] sm:$0xff]   ;;  %v2147_v3 = vld [vmem:[%s2728_s19 + $0x70] sm:$0xff]   ;;  %v2149_v5 = vld [vmem:[%s2728_s19 + $0x68] sm:$0xff]   ;;  %s3207_s23 = sld [smem:[#allocation20_spill]] }
  0xae   : > { %v2146_v2 = vld [vmem:[%s2728_s19 + $0x38] sm:$0xff]   ;;  %1793 = vmatprep.subr.bf16.mxu0 %v2145_v1  ;;  %1945 = vmatprep.subr.bf16.mxu1 %v2145_v1  ;;  %v2148_v4 = vld [vmem:[%s2728_s19 + $0x30] sm:$0xff]   ;;  %v2150_v6 = vld [vmem:[%s2728_s19 + $0x28] sm:$0xff]   ;;  %s3208_s4 = sld [smem:[#allocation19_spill]] }
  0xaf   : > { %1794 = vmatpush3.bf16.msra.mxu0 %v2146_v2  ;;  %1953 = vmatpush3.bf16.msra.mxu1 %v2146_v2  ;;  %v2151_v7 = vld [vmem:[%s2728_s19 + $0x60] sm:$0xff]   ;;  %v2153_v9 = vld [vmem:[%s2728_s19 + $0x58] sm:$0xff]   ;;  %v2155_v11 = vld [vmem:[%s2728_s19 + $0x50] sm:$0xff]  }
  0xb0   : > { %1795 = vmatprep.subr.bf16.mxu0 %v2147_v3  ;;  %1946 = vmatprep.subr.bf16.mxu1 %v2147_v3  ;;  %v2152_v8 = vld [vmem:[%s2728_s19 + $0x20] sm:$0xff]   ;;  %v2154_v10 = vld [vmem:[%s2728_s19 + $0x18] sm:$0xff]   ;;  %v522_v12 = vld [vmem:[%s2700_s26 + $0x8] sm:$0xff] }
  0xb1   : > { %v526_v13 = vld [vmem:[%s2700_s26 + $0x28] sm:$0xff]  ;;  %v530_v14 = vunpack.c.l.s8.bf16 %v522_v12  ;;  %v2156_v16 = vld [vmem:[%s2728_s19 + $0x10] sm:$0xff]   ;;  %v2159_v19 = vld [vmem:[%s2728_s19 + $0x40] sm:$0xff]   ;;  %v532_v25 = vunpack.c.h.s8.bf16 %v522_v12 }
  0xb2   : > { %v538_v15 = vunpack.c.l.s8.bf16 %v526_v13  ;;  %v2157_v17 = vld [vmem:[%s2728_s19 + $0x48] sm:$0xff]   ;;  %v2160_v20 = vld [vmem:[%s2728_s19] sm:$0xff]   ;;  %v540_v26 = vunpack.c.h.s8.bf16 %v526_v13  ;;  %v524_v27 = vld [vmem:[%s2700_s26 + $0x18] sm:$0xff] }
  0xb3   : > { %1796 = vmatpush3.bf16.msra.mxu0 %v2148_v4  ;;  %1954 = vmatpush3.bf16.msra.mxu1 %v2148_v4  ;;  %v2158_v18 = vld [vmem:[%s2728_s19 + $0x8] sm:$0xff]   ;;  %v521_v21 = vld [vmem:[%s2700_s26] sm:$0xff]  ;;  %v528_v28 = vld [vmem:[%s2700_s26 + $0x38] sm:$0xff]  ;;  %v534_v31 = vunpack.c.l.s8.bf16 %v524_v27  ;;  %v536_v37 = vunpack.c.h.s8.bf16 %v524_v27  ;;  %p820_p13 = scmp.eq.s32.totalorder %s3207_s23, 2 }
  0xb4   : > { %1797 = vmatprep.subr.bf16.mxu0 %v2149_v5  ;;  %1947 = vmatprep.subr.bf16.mxu1 %v2149_v5  ;;  %v525_v22 = vld [vmem:[%s2700_s26 + $0x20] sm:$0xff]  ;;  %v529_v23 = vunpack.c.l.s8.bf16 %v521_v21  ;;  %v531_v29 = vunpack.c.h.s8.bf16 %v521_v21  ;;  %v542_v32 = vunpack.c.l.s8.bf16 %v528_v28  ;;  %v523_v33 = vld [vmem:[%s2700_s26 + $0x10] sm:$0xff]  ;;  %v544_v38 = vunpack.c.h.s8.bf16 %v528_v28  ;;  %p821_p2 = scmp.eq.s32.totalorder %s3208_s4, 2 }
  0xb5   : > { %705 = vmatprep.mubr.bf16.mxu0 %v530_v14  ;;  %737 = vmatprep.mubr.bf16.mxu1 %v538_v15  ;;  %v537_v24 = vunpack.c.l.s8.bf16 %v525_v22  ;;  %v539_v30 = vunpack.c.h.s8.bf16 %v525_v22  ;;  %v527_v34 = vld [vmem:[%s2700_s26 + $0x30] sm:$0xff]  ;;  %v533_v35 = vunpack.c.l.s8.bf16 %v523_v33  ;;  %v535_v39 = vunpack.c.h.s8.bf16 %v523_v33  ;;  %s1780_s26 = sshll.u32 %s3208_s4, 7 }
  0xb6   : > { %v541_v36 = vunpack.c.l.s8.bf16 %v527_v34  ;;  %v543_v40 = vunpack.c.h.s8.bf16 %v527_v34  ;;  %p2765_p1 = pnand %p821_p2, %p820_p13  ;;  %s2770_s27 = scalar_lea.vmem [#allocation2], %s1780_s26 }
  0xb7   : > { %1798 = vmatpush3.bf16.msra.mxu0 %v2150_v6  ;;  %1955 = vmatpush3.bf16.msra.mxu1 %v2150_v6  ;;  %v772_v44 = vld [vmem:[%s2770_s27] sm:$0xff]  ;;  %v773_v54 = vld [vmem:[%s2770_s27 + $0x8] sm:$0xff]  ;;  %v774_v0 = vld [vmem:[%s2770_s27 + $0x10] sm:$0xff]  ;;  %s3210_s12 = sld [smem:[#allocation31_spill]] (!%p2765_p1) }
  0xb8   : > { %1799 = vmatprep.subr.bf16.mxu0 %v2151_v7  ;;  %1948 = vmatprep.subr.bf16.mxu1 %v2151_v7  ;;  %v780_v46 = vld [vmem:[%s2770_s27 + $0x40] sm:$0xff]  ;;  %v781_v56 = vld [vmem:[%s2770_s27 + $0x48] sm:$0xff]  ;;  %v782_v2 = vld [vmem:[%s2770_s27 + $0x50] sm:$0xff]  ;;  %s3211_s20 = sld [smem:[#allocation33_spill]] (!%p2765_p1) }
  0xb9   : > { %v783_v12 = vld [vmem:[%s2770_s27 + $0x58] sm:$0xff]  ;;  %v784_v22 = vld [vmem:[%s2770_s27 + $0x60] sm:$0xff] }
  0xbb   : > { %1800 = vmatpush3.bf16.msra.mxu0 %v2152_v8  ;;  %1956 = vmatpush3.bf16.msra.mxu1 %v2152_v8 }
  0xbc   : > { %1801 = vmatprep.subr.bf16.mxu0 %v2153_v9  ;;  %1949 = vmatprep.subr.bf16.mxu1 %v2153_v9 }
  0xbf   : > { %1802 = vmatpush3.bf16.msra.mxu0 %v2154_v10  ;;  %1957 = vmatpush3.bf16.msra.mxu1 %v2154_v10  ;;  %v775_v10 = vld [vmem:[%s2770_s27 + $0x18] sm:$0xff] }
  0xc0   : > { %1803 = vmatprep.subr.bf16.mxu0 %v2155_v11  ;;  %1950 = vmatprep.subr.bf16.mxu1 %v2155_v11 }
  0xc3   : > { %1804 = vmatpush3.bf16.msra.mxu0 %v2156_v16  ;;  %1958 = vmatpush3.bf16.msra.mxu1 %v2156_v16 }
  0xc4   : > { %1805 = vmatprep.subr.bf16.mxu0 %v2157_v17  ;;  %1951 = vmatprep.subr.bf16.mxu1 %v2157_v17 }
  0xc7   : > { %1806 = vmatpush3.bf16.msra.mxu0 %v2158_v18  ;;  %1959 = vmatpush3.bf16.msra.mxu1 %v2158_v18 }
  0xc8   : > { %1807 = vmatprep.subr.bf16.mxu0 %v2159_v19  ;;  %1952 = vmatprep.subr.bf16.mxu1 %v2159_v19 }
  0xcb   : > { %1808 = vmatpush3.bf16.msra.mxu0 %v2160_v20  ;;  %1960 = vmatpush3.bf16.msra.mxu1 %v2160_v20  ;;  %v776_v20 = vld [vmem:[%s2770_s27 + $0x20] sm:$0xff] }
  0xce   : > { %706 = vmatmul.mubr.bf16.vlgmr.msra.gmra.mxu0 %v529_v23  ;;  %738 = vmatmul.mubr.bf16.vlgmr.msra.gmra.mxu1 %v537_v24 }
  0xcf   : > { %713 = vmatprep.mubr.bf16.mxu0 %v532_v25  ;;  %745 = vmatprep.mubr.bf16.mxu1 %v540_v26 }
  0xd6   : > { %714 = vmatmul.mubr.bf16.gmra.mxu0 %v531_v29  ;;  %746 = vmatmul.mubr.bf16.gmra.mxu1 %v539_v30  ;;  %v777_v30 = vld [vmem:[%s2770_s27 + $0x28] sm:$0xff] }
  0xd7   : > { %721 = vmatprep.mubr.bf16.mxu0 %v534_v31  ;;  %753 = vmatprep.mubr.bf16.mxu1 %v542_v32  ;;  %v785_v32 = vld [vmem:[%s2770_s27 + $0x68] sm:$0xff] }
  0xde   : > { %722 = vmatmul.mubr.bf16.gmra.mxu0 %v533_v35  ;;  %754 = vmatmul.mubr.bf16.gmra.mxu1 %v541_v36 }
  0xdf   : > { %729 = vmatprep.mubr.bf16.mxu0 %v536_v37  ;;  %761 = vmatprep.mubr.bf16.mxu1 %v544_v38 }
  0xe6   : > { %730 = vmatmul.mubr.bf16.gmra.mxu0 %v535_v39  ;;  %762 = vmatmul.mubr.bf16.gmra.mxu1 %v543_v40  ;;  %v778_v40 = vld [vmem:[%s2770_s27 + $0x30] sm:$0xff] }
 0x18e   : > { %v1809_v41 = vpop.f32.mrf.mxu0  ;;  %v1833_v42 = vpop.f32.mrf.mxu1 }
 0x190   : > { %v1810_v43 = vpop.f32.mrf.mxu0  ;;  %v1834_v45 = vpop.f32.mrf.mxu1 }
 0x191   : > { %v1811_v47 = vadd.f32 %v1810_v43, %v1809_v41  ;;  %v1835_v48 = vadd.f32 %v1834_v45, %v1833_v42  ;;  %v786_v42 = vld [vmem:[%s2770_s27 + $0x70] sm:$0xff] }
 0x192   : > { %v1812_v49 = vpop.f32.mrf.mxu0  ;;  %v1836_v50 = vpop.f32.mrf.mxu1 }
 0x193   : > { %v788_v51 = vadd.f32 %v1811_v47, %v772_v44  ;;  %v796_v52 = vadd.f32 %v1835_v48, %v780_v46 }
 0x194   : > { %v1813_v53 = vpop.f32.mrf.mxu0  ;;  %v1837_v55 = vpop.f32.mrf.mxu1 }
 0x195   : > { %804 = vst [vmem:[%s2770_s27] sm:$0xff] %v788_v51  ;;  %812 = vst [vmem:[%s2770_s27 + $0x40] sm:$0xff] %v796_v52  ;;  %v1814_v57 = vadd.f32 %v1813_v53, %v1812_v49  ;;  %v1838_v58 = vadd.f32 %v1837_v55, %v1836_v50  ;;  %v779_v50 = vld [vmem:[%s2770_s27 + $0x38] sm:$0xff] }
 0x196   : > { %v1815_v59 = vpop.f32.mrf.mxu0  ;;  %v1839_v60 = vpop.f32.mrf.mxu1  ;;  %v787_v52 = vld [vmem:[%s2770_s27 + $0x78] sm:$0xff] }
 0x197   : > { %v789_v61 = vadd.f32 %v1814_v57, %v773_v54  ;;  %v797_v62 = vadd.f32 %v1838_v58, %v781_v56 }
 0x198   : > { %v1816_v63 = vpop.f32.mrf.mxu0  ;;  %v1840_v1 = vpop.f32.mrf.mxu1 }
 0x199   : > { %805 = vst [vmem:[%s2770_s27 + $0x8] sm:$0xff] %v789_v61  ;;  %813 = vst [vmem:[%s2770_s27 + $0x48] sm:$0xff] %v797_v62  ;;  %v1817_v3 = vadd.f32 %v1816_v63, %v1815_v59  ;;  %v1841_v4 = vadd.f32 %v1840_v1, %v1839_v60 }
 0x19a   : > { %v1818_v5 = vpop.f32.mrf.mxu0  ;;  %v1842_v6 = vpop.f32.mrf.mxu1 }
 0x19b   : > { %v790_v7 = vadd.f32 %v1817_v3, %v774_v0  ;;  %v798_v8 = vadd.f32 %v1841_v4, %v782_v2 }
 0x19c   : > { %v1819_v9 = vpop.f32.mrf.mxu0  ;;  %v1843_v11 = vpop.f32.mrf.mxu1 }
 0x19d   : > { %806 = vst [vmem:[%s2770_s27 + $0x10] sm:$0xff] %v790_v7  ;;  %814 = vst [vmem:[%s2770_s27 + $0x50] sm:$0xff] %v798_v8  ;;  %v1820_v13 = vadd.f32 %v1819_v9, %v1818_v5  ;;  %v1844_v14 = vadd.f32 %v1843_v11, %v1842_v6 }
 0x19e   : > { %v1821_v15 = vpop.f32.mrf.mxu0  ;;  %v1845_v16 = vpop.f32.mrf.mxu1 }
 0x19f   : > { %v791_v17 = vadd.f32 %v1820_v13, %v775_v10  ;;  %v799_v18 = vadd.f32 %v1844_v14, %v783_v12 }
 0x1a0   : > { %v1822_v19 = vpop.f32.mrf.mxu0  ;;  %v1846_v21 = vpop.f32.mrf.mxu1 }
 0x1a1   : > { %807 = vst [vmem:[%s2770_s27 + $0x18] sm:$0xff] %v791_v17  ;;  %815 = vst [vmem:[%s2770_s27 + $0x58] sm:$0xff] %v799_v18  ;;  %v1823_v23 = vadd.f32 %v1822_v19, %v1821_v15  ;;  %v1847_v24 = vadd.f32 %v1846_v21, %v1845_v16 }
 0x1a2   : > { %v1824_v25 = vpop.f32.mrf.mxu0  ;;  %v1848_v26 = vpop.f32.mrf.mxu1 }
 0x1a3   : > { %v792_v27 = vadd.f32 %v1823_v23, %v776_v20  ;;  %v800_v28 = vadd.f32 %v1847_v24, %v784_v22 }
 0x1a4   : > { %v1825_v29 = vpop.f32.mrf.mxu0  ;;  %v1849_v31 = vpop.f32.mrf.mxu1 }
 0x1a5   : > { %808 = vst [vmem:[%s2770_s27 + $0x20] sm:$0xff] %v792_v27  ;;  %816 = vst [vmem:[%s2770_s27 + $0x60] sm:$0xff] %v800_v28  ;;  %v1826_v33 = vadd.f32 %v1825_v29, %v1824_v25  ;;  %v1850_v34 = vadd.f32 %v1849_v31, %v1848_v26 }
 0x1a6   : > { %v1827_v35 = vpop.f32.mrf.mxu0  ;;  %v1851_v36 = vpop.f32.mrf.mxu1 }
 0x1a7   : > { %v793_v37 = vadd.f32 %v1826_v33, %v777_v30  ;;  %v801_v38 = vadd.f32 %v1850_v34, %v785_v32 }
 0x1a8   : > { %v1828_v39 = vpop.f32.mrf.mxu0  ;;  %v1852_v41 = vpop.f32.mrf.mxu1 }
 0x1a9   : > { %809 = vst [vmem:[%s2770_s27 + $0x28] sm:$0xff] %v793_v37  ;;  %817 = vst [vmem:[%s2770_s27 + $0x68] sm:$0xff] %v801_v38  ;;  %v1829_v43 = vadd.f32 %v1828_v39, %v1827_v35  ;;  %v1853_v44 = vadd.f32 %v1852_v41, %v1851_v36 }
 0x1aa   : > { %v1830_v45 = vpop.f32.mrf.mxu0  ;;  %v1854_v46 = vpop.f32.mrf.mxu1 }
 0x1ab   : > { %v794_v47 = vadd.f32 %v1829_v43, %v778_v40  ;;  %v802_v48 = vadd.f32 %v1853_v44, %v786_v42 }
 0x1ac   : > { %v1831_v49 = vpop.f32.mrf.mxu0  ;;  %v1855_v51 = vpop.f32.mrf.mxu1 }
 0x1ad   : > { %810 = vst [vmem:[%s2770_s27 + $0x30] sm:$0xff] %v794_v47  ;;  %818 = vst [vmem:[%s2770_s27 + $0x70] sm:$0xff] %v802_v48  ;;  %v1832_v53 = vadd.f32 %v1831_v49, %v1830_v45  ;;  %v1856_v54 = vadd.f32 %v1855_v51, %v1854_v46  ;;  %825 = sbr.rel (%p2765_p1) target bundleno = 894 (0x37e), region = 68 }
 0x1af   : > { %v795_v55 = vadd.f32 %v1832_v53, %v779_v50  ;;  %v803_v56 = vadd.f32 %v1856_v54, %v787_v52 }
 0x1b1   : > { %811 = vst [vmem:[%s2770_s27 + $0x38] sm:$0xff] %v795_v55  ;;  %819 = vst [vmem:[%s2770_s27 + $0x78] sm:$0xff] %v803_v56 }
 0x1b2   : > { %v842_v57 = vld [vmem:[%s2733_s15] sm:$0xff]  ;;  %v2450_v58 = vmov 1   ;;  %v2451_v59 = vmov 0   ;;  %v2815_v61 = vld [vmem:[%s2733_s15 + $0x8] sm:$0xff]  ;;  %v1352_v62 = vld [vmem:[#allocation8 + $0x78] sm:$0xff]  ;;  %v2452_v9 = vmov 2   ;;  %v987_v30 = vlaneseq }
 0x1b3   : > { %2162 = vset.pattern.permute.xlu1 %v2450_v58  ;;  %2161 = vset.pattern.permute.xlu0 %v2451_v59  ;;  %v2810_v60 = vld [vmem:[%s2733_s15 + $0x40] sm:$0xff]  ;;  %v851_v63 = vld [vmem:[%s2733_s15 + $0x48] sm:$0xff]  ;;  %v1351_v0 = vld [vmem:[#allocation8 + $0x70] sm:$0xff] }
 0x1b4   : > { %1057 = vperm.xlu1 %2162, %v842_v57   ;;  %893 = vperm.xlu0 %2161, %v842_v57   ;;  %v1350_v1 = vld [vmem:[#allocation8 + $0x68] sm:$0xff]  ;;  %v2821_v2 = vld [vmem:[%s2733_s15 + $0x10] sm:$0xff]  ;;  %v1349_v3 = vld [vmem:[#allocation8 + $0x60] sm:$0xff]  ;;  %v988_v33 = vshrl.u32 %v987_v30, 7 }
 0x1b5   : > { %1889 = vmatprep.subr.mxu0 %v1352_v62  ;;  %1961 = vmatprep.subr.mxu1 %v1352_v62  ;;  %v1348_v4 = vld [vmem:[#allocation8 + $0x58] sm:$0xff]  ;;  %v2826_v5 = vld [vmem:[%s2733_s15 + $0x60] sm:$0xff]  ;;  %v1347_v6 = vld [vmem:[#allocation8 + $0x50] sm:$0xff] }
 0x1b6   : > { %1890 = vmatpush3.msra.mxu0 %v1352_v62  ;;  %1977 = vmatpush3.msra.mxu1 %v1352_v62  ;;  %v1346_v7 = vld [vmem:[#allocation8 + $0x48] sm:$0xff]  ;;  %v1345_v10 = vld [vmem:[#allocation8 + $0x40] sm:$0xff]  ;;  %v1344_v11 = vld [vmem:[#allocation8 + $0x38] sm:$0xff]  ;;  %v1138_v38 = vsub.s32 1, %v988_v33  ;;  %v989_v42 = vsub.s32 0, %v988_v33  ;;  %v1287_v51 = vsub.s32 2, %v988_v33 }
 0x1b7   : > { %1891 = vmatprep.subr.mxu0 %v1351_v0  ;;  %1962 = vmatprep.subr.mxu1 %v1351_v0  ;;  %v2830_v8 = vld [vmem:[%s2733_s15 + $0x28] sm:$0xff]  ;;  %v2835_v12 = vld [vmem:[%s2733_s15 + $0x30] sm:$0xff]  ;;  %v1341_v15 = vld [vmem:[#allocation8 + $0x20] sm:$0xff] }
 0x1b8   : > { %1089 = vperm.xlu1 %2162, %v2810_v60   ;;  %933 = vperm.xlu0 %2161, %v2810_v60   ;;  %v1343_v13 = vld [vmem:[#allocation8 + $0x30] sm:$0xff]  ;;  %v1342_v14 = vld [vmem:[#allocation8 + $0x28] sm:$0xff]  ;;  %v1340_v16 = vld [vmem:[#allocation8 + $0x18] sm:$0xff] }
 0x1b9   : > { %1892 = vmatpush3.msra.mxu0 %v1351_v0  ;;  %1978 = vmatpush3.msra.mxu1 %v1351_v0  ;;  %v852_v17 = vld [vmem:[%s2733_s15 + $0x50] sm:$0xff]  ;;  %v1338_v19 = vld [vmem:[#allocation8 + $0x8] sm:$0xff]  ;;  %v845_v20 = vld [vmem:[%s2733_s15 + $0x18] sm:$0xff] }
 0x1ba   : > { %1893 = vmatprep.subr.mxu0 %v1350_v1  ;;  %1963 = vmatprep.subr.mxu1 %v1350_v1  ;;  %v1339_v18 = vld [vmem:[#allocation8 + $0x10] sm:$0xff]  ;;  %v1337_v21 = vld [vmem:[#allocation8] sm:$0xff]  ;;  %v853_v23 = vld [vmem:[%s2733_s15 + $0x58] sm:$0xff] }
 0x1bb   : > { %1894 = vmatpush3.msra.mxu0 %v1350_v1  ;;  %1979 = vmatpush3.msra.mxu1 %v1350_v1  ;;  %v856_v22 = vld [vmem:[%s2733_s15 + $0x70] sm:$0xff]  ;;  %v849_v24 = vld [vmem:[%s2733_s15 + $0x38] sm:$0xff]  ;;  %v846_v25 = vld [vmem:[%s2733_s15 + $0x20] sm:$0xff] }
 0x1bc   : > { %2163 = vset.pattern.permute.xlu1 %v2451_v59  ;;  %898 = vperm.xlu0 %2161, %v2815_v61   ;;  %v857_v26 = vld [vmem:[%s2733_s15 + $0x78] sm:$0xff]  ;;  %v855_v27 = vld [vmem:[%s2733_s15 + $0x68] sm:$0xff]  ;;  %v1024_v34 = vld [vmem:[#allocation2 + $0x80] sm:$0xff] }
 0x1bd   : > { %938 = vperm.xlu1 %2163, %v851_v63   ;;  %1895 = vmatprep.subr.mxu0 %v1349_v3  ;;  %v826_v35 = vld [vmem:[%s2711_s5] sm:$0xff]  ;;  %v1033_v52 = vld [vmem:[#allocation2 + $0xc8] sm:$0xff] }
 0x1be   : > { %1896 = vmatpush3.msra.mxu0 %v1349_v3  ;;  %1964 = vmatprep.subr.mxu1 %v1349_v3  ;;  %v859_v36 = vld [vmem:[#allocation2] sm:$0xff]  ;;  %v1040_v41 = vadd.f32 %v1024_v34, %v826_v35  ;;  %v868_v55 = vld [vmem:[#allocation2 + $0x48] sm:$0xff] }
 0x1bf   : > { %1897 = vmatprep.subr.mxu0 %v1348_v4  ;;  %1980 = vmatpush3.msra.mxu1 %v1349_v3  ;;  %v858_v40 = vld [vmem:[%s3210_s12] sm:$0x7]  ;;  %v875_v43 = vadd.f32 %v859_v36, %v826_v35  ;;  %v835_v56 = vld [vmem:[%s2711_s5 + $0x48] sm:$0xff] }
 0x1c0   : > { %903 = vperm.xlu0 %2161, %v2821_v2   ;;  %1898 = vmatpush3.msra.mxu0 %v1348_v4  ;;  %v2884_v45 = vrot.slane %v858_v40, %v1138_v38  ;;  %v1173_v46 = vld [vmem:[#allocation2 + $0x100] sm:$0xff]  ;;  %v2886_v48 = vrot.slane %v858_v40, %v989_v42  ;;  %v827_v0 = vld [vmem:[%s2711_s5 + $0x8] sm:$0xff] }
 0x1c1   : > { %2164 = vset.pattern.permute.xlu1 %v2450_v58  ;;  %1899 = vmatprep.subr.mxu0 %v1347_v6  ;;  %v1189_v54 = vadd.f32 %v1173_v46, %v826_v35  ;;  %v867_v42 = vld [vmem:[#allocation2 + $0x40] sm:$0xff]  ;;  %v869_v46 = vld [vmem:[#allocation2 + $0x50] sm:$0xff] }
 0x1c2   : > { %1093 = vperm.xlu1 %2164, %v851_v63   ;;  %1900 = vmatpush3.msra.mxu0 %v1347_v6 }
 0x1c3   : > { %1901 = vmatprep.subr.mxu0 %v1346_v7  ;;  %1965 = vmatprep.subr.mxu1 %v1348_v4 }
 0x1c4   : > { %953 = vperm.xlu0 %2161, %v2826_v5   ;;  %1902 = vmatpush3.msra.mxu0 %v1346_v7 }
 0x1c5   : > { %1903 = vmatprep.subr.mxu0 %v1345_v10  ;;  %1981 = vmatpush3.msra.mxu1 %v1348_v4  ;;  %v1182_v4 = vld [vmem:[#allocation2 + $0x148] sm:$0xff] }
 0x1c6   : > { %2165 = vset.pattern.permute.xlu1 %v2452_v9  ;;  %1904 = vmatpush3.msra.mxu0 %v1345_v10 }
 0x1c7   : > { %1206 = vperm.xlu1 %2165, %v842_v57   ;;  %1905 = vmatprep.subr.mxu0 %v1344_v11 }
 0x1c8   : > { %918 = vperm.xlu0 %2161, %v2830_v8   ;;  %1906 = vmatpush3.msra.mxu0 %v1344_v11 }
 0x1c9   : > { %1907 = vmatprep.subr.mxu0 %v1343_v13  ;;  %1966 = vmatprep.subr.mxu1 %v1347_v6 }
 0x1ca   : > { %1908 = vmatpush3.msra.mxu0 %v1343_v13  ;;  %1982 = vmatpush3.msra.mxu1 %v1347_v6 }
 0x1cb   : > { %1210 = vperm.xlu1 %2165, %v2815_v61   ;;  %1909 = vmatprep.subr.mxu0 %v1342_v14 }
 0x1cc   : > { %923 = vperm.xlu0 %2161, %v2835_v12   ;;  %1910 = vmatpush3.msra.mxu0 %v1342_v14 }
 0x1cd   : > { %1911 = vmatprep.subr.mxu0 %v1341_v15  ;;  %1967 = vmatprep.subr.mxu1 %v1346_v7 }
 0x1ce   : > { %1912 = vmatpush3.msra.mxu0 %v1341_v15  ;;  %1983 = vmatpush3.msra.mxu1 %v1346_v7 }
 0x1cf   : > { %1242 = vperm.xlu1 %2165, %v851_v63   ;;  %1913 = vmatprep.subr.mxu0 %v1340_v16  ;;  %v884_v63 = vadd.f32 %v868_v55, %v835_v56  ;;  %v1026_v55 = vld [vmem:[#allocation2 + $0x90] sm:$0xff] }
 0x1d0   : > { %2176 = vset.pattern.permute.xlu0 %v2450_v58  ;;  %1914 = vmatpush3.msra.mxu0 %v1340_v16 }
 0x1d1   : > { %1061 = vperm.xlu0 %2176, %v2815_v61   ;;  %1915 = vmatprep.subr.mxu0 %v1339_v18  ;;  %v2893_v61 = vrot.slane %v858_v40, %v1287_v51  ;;  %v1032_v40 = vld [vmem:[#allocation2 + $0xc0] sm:$0xff] }
 0x1d2   : > { %1916 = vmatpush3.msra.mxu0 %v1339_v18  ;;  %1968 = vmatprep.subr.mxu1 %v1345_v10 }
 0x1d3   : > { %2166 = vset.pattern.permute.xlu1 %v2451_v59  ;;  %1917 = vmatprep.subr.mxu0 %v1338_v19 }
 0x1d4   : > { %943 = vperm.xlu1 %2166, %v852_v17   ;;  %1918 = vmatpush3.msra.mxu0 %v1338_v19 }
 0x1d5   : > { %1097 = vperm.xlu0 %2176, %v852_v17   ;;  %1919 = vmatprep.subr.mxu0 %v1337_v21 }
 0x1d6   : > { %1920 = vmatpush3.msra.mxu0 %v1337_v21  ;;  %1984 = vmatpush3.msra.mxu1 %v1345_v10  ;;  %v1025_v10 = vld [vmem:[#allocation2 + $0x88] sm:$0xff] }
 0x1d7   : > { %1969 = vmatprep.subr.mxu1 %v1344_v11 }
 0x1d8   : > { %2167 = vset.pattern.permute.xlu1 %v2450_v58  ;;  %1985 = vmatpush3.msra.mxu1 %v1344_v11 }
 0x1d9   : > { %1065 = vperm.xlu1 %2167, %v2821_v2   ;;  %1069 = vperm.xlu0 %2176, %v845_v20  }
 0x1da   : > { %1970 = vmatprep.subr.mxu1 %v1343_v13 }
 0x1db   : > { %1986 = vmatpush3.msra.mxu1 %v1343_v13 }
 0x1dc   : > { %1971 = vmatprep.subr.mxu1 %v1342_v14 }
 0x1dd   : > { %2168 = vset.pattern.permute.xlu1 %v2451_v59  ;;  %1077 = vperm.xlu0 %2176, %v2830_v8  }
 0x1de   : > { %908 = vperm.xlu1 %2168, %v845_v20   ;;  %1987 = vmatpush3.msra.mxu1 %v1342_v14  ;;  %v1198_v14 = vadd.f32 %v1182_v4, %v835_v56 }
 0x1df   : > { %1972 = vmatprep.subr.mxu1 %v1341_v15 }
 0x1e0   : > { %1988 = vmatpush3.msra.mxu1 %v1341_v15 }
 0x1e1   : > { %1113 = vperm.xlu0 %2176, %v856_v22   ;;  %1973 = vmatprep.subr.mxu1 %v1340_v16 }
 0x1e2   : > { %948 = vperm.xlu1 %2168, %v853_v23   ;;  %1989 = vmatpush3.msra.mxu1 %v1340_v16 }
 0x1e3   : > { %1974 = vmatprep.subr.mxu1 %v1339_v18 }
 0x1e4   : > { %1990 = vmatpush3.msra.mxu1 %v1339_v18  ;;  %v1041_v18 = vadd.f32 %v1025_v10, %v827_v0 }
 0x1e5   : > { %1085 = vperm.xlu0 %2176, %v849_v24   ;;  %1975 = vmatprep.subr.mxu1 %v1338_v19 }
 0x1e6   : > { %2169 = vset.pattern.permute.xlu1 %v2450_v58  ;;  %1991 = vmatpush3.msra.mxu1 %v1338_v19 }
 0x1e7   : > { %1101 = vperm.xlu1 %2169, %v853_v23   ;;  %1976 = vmatprep.subr.mxu1 %v1337_v21 }
 0x1e8   : > { %1992 = vmatpush3.msra.mxu1 %v1337_v21 }
 0x1e9   : > { %2180 = vset.pattern.permute.xlu0 %v2452_v9 }
 0x1ea   : > { %1238 = vperm.xlu0 %2180, %v2810_v60   ;;  %v1049_v60 = vadd.f32 %v1033_v52, %v835_v56  ;;  %v861_v52 = vld [vmem:[#allocation2 + $0x10] sm:$0xff] }
 0x1eb   : > { %2170 = vset.pattern.permute.xlu1 %v2452_v9 }
 0x1ec   : > { %1246 = vperm.xlu1 %2170, %v852_v17  }
 0x1ee   : > { %1214 = vperm.xlu0 %2180, %v2821_v2  }
 0x1f0   : > { %1218 = vperm.xlu1 %2170, %v845_v20  }
 0x1f2   : > { %1250 = vperm.xlu0 %2180, %v853_v23  }
 0x1f4   : > { %2171 = vset.pattern.permute.xlu1 %v2451_v59 }
 0x1f5   : > { %913 = vperm.xlu1 %2171, %v846_v25  }
 0x1f6   : > { %1254 = vperm.xlu0 %2180, %v2826_v5  }
 0x1f9   : > { %2172 = vset.pattern.permute.xlu1 %v2450_v58 }
 0x1fa   : > { %1073 = vperm.xlu1 %2172, %v846_v25   ;;  %1230 = vperm.xlu0 %2180, %v2835_v12  }
 0x1fe   : > { %1105 = vperm.xlu1 %2172, %v2826_v5   ;;  %1266 = vperm.xlu0 %2180, %v857_v26  }
 0x202   : > { %2173 = vset.pattern.permute.xlu1 %v2451_v59 }
 0x203   : > { %958 = vperm.xlu1 %2173, %v855_v27  }
 0x207   : > { %2174 = vset.pattern.permute.xlu1 %v2450_v58 }
 0x208   : > { %1109 = vperm.xlu1 %2174, %v855_v27  }
 0x20c   : > { %2175 = vset.pattern.permute.xlu1 %v2452_v9 }
 0x20d   : > { %1222 = vperm.xlu1 %2175, %v846_v25  }
 0x211   : > { %1226 = vperm.xlu1 %2175, %v2830_v8   ;;  %v1174_v8 = vld [vmem:[#allocation2 + $0x108] sm:$0xff] }
 0x212   : > { %v1190_v17 = vadd.f32 %v1174_v8, %v827_v0 }
 0x215   : > { %1258 = vperm.xlu1 %2175, %v855_v27  }
 0x219   : > { %2177 = vset.pattern.permute.xlu1 %v2451_v59 }
 0x21a   : > { %963 = vperm.xlu1 %2177, %v856_v22  }
 0x21e   : > { %2178 = vset.pattern.permute.xlu1 %v2450_v58 }
 0x21f   : > { %1081 = vperm.xlu1 %2178, %v2835_v12  }
 0x223   : > { %2179 = vset.pattern.permute.xlu1 %v2451_v59  ;;  %v860_v59 = vld [vmem:[#allocation2 + $0x8] sm:$0xff] }
 0x224   : > { %928 = vperm.xlu1 %2179, %v849_v24   ;;  %v876_v3 = vadd.f32 %v860_v59, %v827_v0 }
 0x228   : > { %968 = vperm.xlu1 %2179, %v857_v26  }
 0x22c   : > { %2181 = vset.pattern.permute.xlu1 %v2450_v58 }
 0x22d   : > { %1117 = vperm.xlu1 %2181, %v857_v26  }
 0x22f   : > { %v1058_v28 = vpop.permute.xlu1 %1057  ;;  %v894_v29 = vpop.permute.xlu0 %893 }
 0x230   : > { %v1120_v47 = vmul.f32 %v1058_v28, %v1040_v41  ;;  %v971_v49 = vmul.f32 %v894_v29, %v875_v43  ;;  %v834_v41 = vld [vmem:[%s2711_s5 + $0x40] sm:$0xff] }
 0x231   : > { %2182 = vset.pattern.permute.xlu1 %v2452_v9  ;;  %v883_v51 = vadd.f32 %v867_v42, %v834_v41 }
 0x232   : > { %1262 = vperm.xlu1 %2182, %v856_v22   ;;  %v1140_v57 = vmul.f32 %v2884_v45, %v1120_v47  ;;  %v991_v58 = vmul.f32 %v2886_v48, %v971_v49  ;;  %v836_v47 = vld [vmem:[%s2711_s5 + $0x50] sm:$0xff] }
 0x233   : > { %v2874_v31 = vpop.permute.xlu1 %1089  ;;  %v2876_v32 = vpop.permute.xlu0 %933  ;;  %v1034_v49 = vld [vmem:[#allocation2 + $0xd0] sm:$0xff] }
 0x234   : > { %v1156_v7 = vadd.f32 %v1140_v57, %v991_v58  ;;  %v885_v57 = vadd.f32 %v869_v46, %v836_v47  ;;  %v1050_v58 = vadd.f32 %v1034_v49, %v836_v47 }
 0x236   : > { %1234 = vperm.xlu1 %2182, %v849_v24  }
 0x237   : > { %v899_v37 = vpop.permute.xlu0 %898 }
 0x238   : > { %v939_v39 = vpop.permute.xlu1 %938  ;;  %v972_v15 = vmul.f32 %v899_v37, %v876_v3  ;;  %v1181_v3 = vld [vmem:[#allocation2 + $0x140] sm:$0xff] }
 0x239   : > { %v980_v11 = vmul.f32 %v939_v39, %v884_v63  ;;  %v862_v63 = vld [vmem:[#allocation2 + $0x18] sm:$0xff] }
 0x23a   : > { %v992_v22 = vmul.f32 %v2886_v48, %v972_v15  ;;  %v1197_v15 = vadd.f32 %v1181_v3, %v834_v41 }
 0x23b   : > { %v2882_v44 = vpop.permute.xlu0 %903  ;;  %v1000_v20 = vmul.f32 %v2886_v48, %v980_v11  ;;  %v1035_v11 = vld [vmem:[#allocation2 + $0xd8] sm:$0xff] }
 0x23d   : > { %v1094_v50 = vpop.permute.xlu1 %1093 }
 0x23e   : > { %v1129_v5 = vmul.f32 %v1094_v50, %v1049_v60  ;;  %v1048_v50 = vadd.f32 %v1032_v40, %v834_v41  ;;  %v1027_v60 = vld [vmem:[#allocation2 + $0x98] sm:$0xff] }
 0x23f   : > { %v2888_v53 = vpop.permute.xlu0 %953 }
 0x240   : > { %v1149_v16 = vmul.f32 %v2884_v45, %v1129_v5  ;;  %v1128_v4 = vmul.f32 %v2874_v31, %v1048_v50  ;;  %v979_v5 = vmul.f32 %v2876_v32, %v883_v51 }
 0x242   : > { %v1207_v62 = vpop.permute.xlu1 %1206  ;;  %v1165_v24 = vadd.f32 %v1149_v16, %v1000_v20  ;;  %v1175_v20 = vld [vmem:[#allocation2 + $0x110] sm:$0xff]  ;;  %v1148_v31 = vmul.f32 %v2884_v45, %v1128_v4  ;;  %v999_v32 = vmul.f32 %v2886_v48, %v979_v5 }
 0x243   : > { %v1269_v1 = vmul.f32 %v1207_v62, %v1189_v54  ;;  %v2896_v2 = vpop.permute.xlu0 %918  ;;  %v828_v54 = vld [vmem:[%s2711_s5 + $0x10] sm:$0xff]  ;;  %v829_v62 = vld [vmem:[%s2711_s5 + $0x18] sm:$0xff] }
 0x244   : > { %v877_v0 = vadd.f32 %v861_v52, %v828_v54  ;;  %v878_v10 = vadd.f32 %v862_v63, %v829_v62 }
 0x245   : > { %v1289_v6 = vmul.f32 %v2893_v61, %v1269_v1  ;;  %v1042_v1 = vadd.f32 %v1026_v55, %v828_v54 }
 0x246   : > { %v1211_v9 = vpop.permute.xlu1 %1210  ;;  %v973_v16 = vmul.f32 %v2882_v44, %v877_v0 }
 0x247   : > { %v2899_v12 = vpop.permute.xlu0 %923  ;;  %v1305_v13 = vadd.f32 %v1289_v6, %v1156_v7  ;;  %v1270_v25 = vmul.f32 %v1211_v9, %v1190_v17  ;;  %v1043_v9 = vadd.f32 %v1027_v60, %v829_v62 }
 0x249   : > { %1321 = vst [vmem:[%s2737_s3] sm:$0xff] %v1305_v13  ;;  %1921 = vmatprep.mubr.f32.mxu0 %v1305_v13  ;;  %v1290_v34 = vmul.f32 %v2893_v61, %v1270_v25  ;;  %v1183_v13 = vld [vmem:[#allocation2 + $0x150] sm:$0xff] }
 0x24a   : > { %v1243_v19 = vpop.permute.xlu1 %1242 }
 0x24b   : > { %v1278_v21 = vmul.f32 %v1243_v19, %v1198_v14  ;;  %v837_v19 = vld [vmem:[%s2711_s5 + $0x58] sm:$0xff] }
 0x24c   : > { %v1062_v23 = vpop.permute.xlu0 %1061 }
 0x24d   : > { %v1298_v26 = vmul.f32 %v2893_v61, %v1278_v21  ;;  %v1121_v27 = vmul.f32 %v1062_v23, %v1041_v18  ;;  %v870_v18 = vld [vmem:[#allocation2 + $0x58] sm:$0xff]  ;;  %v1051_v21 = vadd.f32 %v1035_v11, %v837_v19 }
 0x24e   : > { %v1176_v23 = vld [vmem:[#allocation2 + $0x118] sm:$0xff] }
 0x24f   : > { %v1141_v28 = vmul.f32 %v2884_v45, %v1121_v27  ;;  %v944_v29 = vpop.permute.xlu1 %943  ;;  %v2907_v30 = vadd.f32 %v1298_v26, %v1165_v24  ;;  %v1192_v40 = vadd.f32 %v1176_v23, %v829_v62 }
 0x250   : > { %v1098_v33 = vpop.permute.xlu0 %1097  ;;  %v981_v7 = vmul.f32 %v944_v29, %v885_v57  ;;  %v886_v29 = vadd.f32 %v870_v18, %v837_v19 }
 0x251   : > { %v1157_v35 = vadd.f32 %v1141_v28, %v992_v22  ;;  %1330 = vst [vmem:[%s2737_s3 + $0x48] sm:$0xff] %v2907_v30  ;;  %v1130_v8 = vmul.f32 %v1098_v33, %v1050_v58  ;;  %v1199_v22 = vadd.f32 %v1183_v13, %v836_v47  ;;  %v1191_v33 = vadd.f32 %v1175_v20, %v828_v54 }
 0x252   : > { %v1001_v24 = vmul.f32 %v2886_v48, %v981_v7  ;;  %v1164_v47 = vadd.f32 %v1148_v31, %v999_v32 }
 0x253   : > { %v1306_v36 = vadd.f32 %v1290_v34, %v1157_v35  ;;  %v1150_v25 = vmul.f32 %v2884_v45, %v1130_v8  ;;  %v1184_v34 = vld [vmem:[#allocation2 + $0x158] sm:$0xff]  ;;  %v993_v35 = vmul.f32 %v2886_v48, %v973_v16 }
 0x254   : > { %v1066_v37 = vpop.permute.xlu1 %1065  ;;  %v1070_v38 = vpop.permute.xlu0 %1069  ;;  %v1200_v51 = vadd.f32 %v1184_v34, %v837_v19 }
 0x255   : > { %1322 = vst [vmem:[%s2737_s3 + $0x8] sm:$0xff] %v1306_v36  ;;  %1922 = vmatmul.mubr.f32.vlgmr.msra.gmra.mxu0 %v1306_v36  ;;  %v1122_v17 = vmul.f32 %v1066_v37, %v1042_v1  ;;  %v1123_v26 = vmul.f32 %v1070_v38, %v1043_v9  ;;  %v1166_v49 = vadd.f32 %v1150_v25, %v1001_v24 }
 0x257   : > { %v1142_v36 = vmul.f32 %v2884_v45, %v1122_v17  ;;  %v1143_v38 = vmul.f32 %v2884_v45, %v1123_v26  ;;  %v1036_v17 = vld [vmem:[#allocation2 + $0xe0] sm:$0xff] }
 0x258   : > { %v2913_v39 = vpop.permute.xlu0 %1077  ;;  %v1028_v26 = vld [vmem:[#allocation2 + $0xa0] sm:$0xff] }
 0x259   : > { %v909_v43 = vpop.permute.xlu1 %908  ;;  %v1158_v58 = vadd.f32 %v1142_v36, %v993_v35  ;;  %v864_v35 = vld [vmem:[#allocation2 + $0x28] sm:$0xff] }
 0x25a   : > { %v974_v27 = vmul.f32 %v909_v43, %v878_v10  ;;  %v831_v36 = vld [vmem:[%s2711_s5 + $0x28] sm:$0xff] }
 0x25c   : > { %v2918_v56 = vpop.permute.xlu0 %1113  ;;  %v994_v43 = vmul.f32 %v2886_v48, %v974_v27 }
 0x25d   : > { %v949_v59 = vpop.permute.xlu1 %948 }
 0x25e   : > { %v982_v52 = vmul.f32 %v949_v59, %v886_v29  ;;  %v1159_v3 = vadd.f32 %v1143_v38, %v994_v43  ;;  %v863_v29 = vld [vmem:[#allocation2 + $0x20] sm:$0xff]  ;;  %v1037_v43 = vld [vmem:[#allocation2 + $0xe8] sm:$0xff] }
 0x260   : > { %v2923_v6 = vpop.permute.xlu0 %1085  ;;  %v1002_v59 = vmul.f32 %v2886_v48, %v982_v52 }
 0x262   : > { %v1102_v14 = vpop.permute.xlu1 %1101 }
 0x263   : > { %v1131_v41 = vmul.f32 %v1102_v14, %v1051_v21  ;;  %v871_v14 = vld [vmem:[#allocation2 + $0x60] sm:$0xff] }
 0x265   : > { %v1239_v28 = vpop.permute.xlu0 %1238  ;;  %v1151_v62 = vmul.f32 %v2884_v45, %v1131_v41 }
 0x266   : > { %v1277_v44 = vmul.f32 %v1239_v28, %v1197_v15  ;;  %v838_v15 = vld [vmem:[%s2711_s5 + $0x60] sm:$0xff] }
 0x267   : > { %v1247_v37 = vpop.permute.xlu1 %1246  ;;  %v1167_v9 = vadd.f32 %v1151_v62, %v1002_v59  ;;  %v887_v18 = vadd.f32 %v871_v14, %v838_v15  ;;  %v1052_v32 = vadd.f32 %v1036_v17, %v838_v15 }
 0x268   : > { %v1297_v42 = vmul.f32 %v2893_v61, %v1277_v44  ;;  %v1279_v46 = vmul.f32 %v1247_v37, %v1199_v22  ;;  %v830_v44 = vld [vmem:[%s2711_s5 + $0x20] sm:$0xff] }
 0x269   : > { %v1215_v50 = vpop.permute.xlu0 %1214  ;;  %v983_v21 = vmul.f32 %v2888_v53, %v887_v18  ;;  %v1044_v37 = vadd.f32 %v1028_v26, %v830_v44  ;;  %v1029_v53 = vld [vmem:[#allocation2 + $0xa8] sm:$0xff]  ;;  %v879_v41 = vadd.f32 %v863_v29, %v830_v44 }
 0x26a   : > { %v1299_v54 = vmul.f32 %v2893_v61, %v1279_v46  ;;  %v1271_v55 = vmul.f32 %v1215_v50, %v1191_v33  ;;  %v1313_v57 = vadd.f32 %v1297_v42, %v1164_v47  ;;  %v880_v42 = vadd.f32 %v864_v35, %v831_v36  ;;  %v1177_v46 = vld [vmem:[#allocation2 + $0x120] sm:$0xff] }
 0x26b   : > { %v1219_v60 = vpop.permute.xlu1 %1218  ;;  %v1003_v25 = vmul.f32 %v2886_v48, %v983_v21  ;;  %v1045_v47 = vadd.f32 %v1029_v53, %v831_v36  ;;  %v1179_v21 = vld [vmem:[#allocation2 + $0x130] sm:$0xff] }
 0x26c   : > { %v1291_v63 = vmul.f32 %v2893_v61, %v1271_v55  ;;  %v1272_v0 = vmul.f32 %v1219_v60, %v1192_v40  ;;  %1329 = vst [vmem:[%s2737_s3 + $0x40] sm:$0xff] %v1313_v57  ;;  %1933 = vmatprep.mubr.f32.mxu1 %v1313_v57  ;;  %v1315_v1 = vadd.f32 %v1299_v54, %v1166_v49  ;;  %v872_v54 = vld [vmem:[#allocation2 + $0x68] sm:$0xff] }
 0x26d   : > { %v1251_v4 = vpop.permute.xlu0 %1250  ;;  %1934 = vmatmul.mubr.f32.vlgmr.msra.gmra.mxu1 %v2907_v30  ;;  %v1185_v30 = vld [vmem:[#allocation2 + $0x160] sm:$0xff]  ;;  %v976_v52 = vmul.f32 %v2896_v2, %v880_v42  ;;  %v839_v55 = vld [vmem:[%s2711_s5 + $0x68] sm:$0xff] }
 0x26e   : > { %v1292_v5 = vmul.f32 %v2893_v61, %v1272_v0  ;;  %v1280_v7 = vmul.f32 %v1251_v4, %v1200_v51  ;;  %1331 = vst [vmem:[%s2737_s3 + $0x50] sm:$0xff] %v1315_v1  ;;  %1936 = vmatprep.mubr.f32.mxu1 %v1315_v1  ;;  %v1307_v8 = vadd.f32 %v1291_v63, %v1158_v58  ;;  %v1178_v57 = vld [vmem:[#allocation2 + $0x128] sm:$0xff] }
 0x26f   : > { %v1201_v19 = vadd.f32 %v1185_v30, %v838_v15  ;;  %v1193_v51 = vadd.f32 %v1177_v46, %v830_v44  ;;  %v1125_v58 = vmul.f32 %v2913_v39, %v1045_v47  ;;  %v1053_v62 = vadd.f32 %v1037_v43, %v839_v55  ;;  %v874_v46 = vld [vmem:[#allocation2 + $0x78] sm:$0xff]  ;;  %v873_v47 = vld [vmem:[#allocation2 + $0x70] sm:$0xff] }
 0x270   : > { %v1300_v10 = vmul.f32 %v2893_v61, %v1280_v7  ;;  %v914_v11 = vpop.permute.xlu1 %913  ;;  %1323 = vst [vmem:[%s2737_s3 + $0x10] sm:$0xff] %v1307_v8  ;;  %1924 = vmatprep.mubr.f32.mxu0 %v1307_v8  ;;  %v1308_v13 = vadd.f32 %v1292_v5, %v1159_v3  ;;  %v888_v1 = vadd.f32 %v872_v54, %v839_v55  ;;  %v1186_v5 = vld [vmem:[#allocation2 + $0x168] sm:$0xff]  ;;  %v841_v43 = vld [vmem:[%s2711_s5 + $0x78] sm:$0xff] }
 0x271   : > { %v1255_v31 = vpop.permute.xlu0 %1254  ;;  %v975_v50 = vmul.f32 %v914_v11, %v879_v41  ;;  %v1194_v4 = vadd.f32 %v1178_v57, %v831_v36  ;;  %v996_v59 = vmul.f32 %v2886_v48, %v976_v52  ;;  %v1145_v2 = vmul.f32 %v2884_v45, %v1125_v58  ;;  %v866_v58 = vld [vmem:[#allocation2 + $0x38] sm:$0xff] }
 0x272   : > { %1324 = vst [vmem:[%s2737_s3 + $0x18] sm:$0xff] %v1308_v13  ;;  %1925 = vmatmul.mubr.f32.gmra.mxu0 %v1308_v13  ;;  %v1316_v16 = vadd.f32 %v1300_v10, %v1167_v9  ;;  %v1281_v22 = vmul.f32 %v1255_v31, %v1201_v19  ;;  %v1202_v14 = vadd.f32 %v1186_v5, %v839_v55  ;;  %v865_v31 = vld [vmem:[#allocation2 + $0x30] sm:$0xff] }
 0x273   : > { %v995_v0 = vmul.f32 %v2886_v48, %v975_v50  ;;  %v1161_v15 = vadd.f32 %v1145_v2, %v996_v59  ;;  %v1038_v50 = vld [vmem:[#allocation2 + $0xf0] sm:$0xff]  ;;  %v890_v54 = vadd.f32 %v874_v46, %v841_v43 }
 0x274   : > { %1332 = vst [vmem:[%s2737_s3 + $0x58] sm:$0xff] %v1316_v16  ;;  %1937 = vmatmul.mubr.f32.gmra.mxu1 %v1316_v16  ;;  %v1301_v28 = vmul.f32 %v2893_v61, %v1281_v22 }
 0x275   : > { %v1074_v20 = vpop.permute.xlu1 %1073  ;;  %v1231_v44 = vpop.permute.xlu0 %1230 }
 0x276   : > { %v1124_v49 = vmul.f32 %v1074_v20, %v1044_v37 }
 0x278   : > { %v1144_v60 = vmul.f32 %v2884_v45, %v1124_v49 }
 0x279   : > { %v1106_v23 = vpop.permute.xlu1 %1105 }
 0x27a   : > { %v1132_v24 = vmul.f32 %v1106_v23, %v1052_v32  ;;  %v1160_v7 = vadd.f32 %v1144_v60, %v995_v0  ;;  %v832_v32 = vld [vmem:[%s2711_s5 + $0x30] sm:$0xff]  ;;  %v1031_v0 = vld [vmem:[#allocation2 + $0xb8] sm:$0xff] }
 0x27c   : > { %v1152_v27 = vmul.f32 %v2884_v45, %v1132_v24  ;;  %v1030_v24 = vld [vmem:[#allocation2 + $0xb0] sm:$0xff] }
 0x27d   : > { %v1046_v29 = vadd.f32 %v1030_v24, %v832_v32 }
 0x27e   : > { %v1168_v33 = vadd.f32 %v1152_v27, %v1003_v25  ;;  %v959_v34 = vpop.permute.xlu1 %958  ;;  %v881_v25 = vadd.f32 %v865_v31, %v832_v32 }
 0x27f   : > { %v984_v10 = vmul.f32 %v959_v34, %v888_v1  ;;  %v833_v1 = vld [vmem:[%s2711_s5 + $0x38] sm:$0xff] }
 0x280   : > { %v1317_v40 = vadd.f32 %v1301_v28, %v1168_v33  ;;  %v1195_v28 = vadd.f32 %v1179_v21, %v832_v32  ;;  %v977_v33 = vmul.f32 %v2899_v12, %v881_v25  ;;  %v1039_v12 = vld [vmem:[#allocation2 + $0xf8] sm:$0xff]  ;;  %v882_v5 = vadd.f32 %v866_v58, %v833_v1 }
 0x281   : > { %v1004_v18 = vmul.f32 %v2886_v48, %v984_v10  ;;  %v1055_v60 = vadd.f32 %v1039_v12, %v841_v43 }
 0x282   : > { %1333 = vst [vmem:[%s2737_s3 + $0x60] sm:$0xff] %v1317_v40  ;;  %1939 = vmatprep.mubr.f32.mxu1 %v1317_v40  ;;  %v1275_v34 = vmul.f32 %v1231_v44, %v1195_v28  ;;  %v997_v37 = vmul.f32 %v2886_v48, %v977_v33 }
 0x283   : > { %v1110_v38 = vpop.permute.xlu1 %1109 }
 0x284   : > { %v1133_v8 = vmul.f32 %v1110_v38, %v1053_v62  ;;  %v1295_v53 = vmul.f32 %v2893_v61, %v1275_v34  ;;  %v1188_v38 = vld [vmem:[#allocation2 + $0x178] sm:$0xff] }
 0x285   : > { %v1204_v57 = vadd.f32 %v1188_v38, %v841_v43 }
 0x286   : > { %v1153_v30 = vmul.f32 %v2884_v45, %v1133_v8 }
 0x288   : > { %v1223_v63 = vpop.permute.xlu1 %1222  ;;  %v1169_v22 = vadd.f32 %v1153_v30, %v1004_v18 }
 0x289   : > { %v1273_v3 = vmul.f32 %v1223_v63, %v1193_v51  ;;  %v840_v51 = vld [vmem:[%s2711_s5 + $0x70] sm:$0xff]  ;;  %v1267_v63 = vpop.permute.xlu0 %1266 }
 0x28a   : > { %v889_v55 = vadd.f32 %v873_v47, %v840_v51  ;;  %v1054_v62 = vadd.f32 %v1038_v50, %v840_v51 }
 0x28b   : > { %v1293_v9 = vmul.f32 %v2893_v61, %v1273_v3 }
 0x28c   : > { %v1227_v39 = vpop.permute.xlu1 %1226 }
 0x28d   : > { %v1274_v11 = vmul.f32 %v1227_v39, %v1194_v4  ;;  %v1309_v13 = vadd.f32 %v1293_v9, %v1160_v7  ;;  %v1187_v4 = vld [vmem:[#allocation2 + $0x170] sm:$0xff]  ;;  %v1284_v7 = vmul.f32 %v1267_v63, %v1204_v57  ;;  %v1134_v9 = vmul.f32 %v2918_v56, %v1054_v62 }
 0x28e   : > { %v1047_v39 = vadd.f32 %v1031_v0, %v833_v1  ;;  %v1203_v10 = vadd.f32 %v1187_v4, %v840_v51 }
 0x28f   : > { %v1294_v16 = vmul.f32 %v2893_v61, %v1274_v11  ;;  %1325 = vst [vmem:[%s2737_s3 + $0x20] sm:$0xff] %v1309_v13  ;;  %1927 = vmatprep.mubr.f32.mxu0 %v1309_v13 }
 0x290   : > { %v1259_v17 = vpop.permute.xlu1 %1258  ;;  %v1127_v56 = vmul.f32 %v2923_v6, %v1047_v39 }
 0x291   : > { %v1282_v19 = vmul.f32 %v1259_v17, %v1202_v14  ;;  %v1310_v20 = vadd.f32 %v1294_v16, %v1161_v15  ;;  %v1180_v14 = vld [vmem:[#allocation2 + $0x138] sm:$0xff]  ;;  %v1304_v16 = vmul.f32 %v2893_v61, %v1284_v7 }
 0x292   : > { %v1196_v31 = vadd.f32 %v1180_v14, %v833_v1  ;;  %v1147_v25 = vmul.f32 %v2884_v45, %v1127_v56 }
 0x293   : > { %v1302_v23 = vmul.f32 %v2893_v61, %v1282_v19  ;;  %1326 = vst [vmem:[%s2737_s3 + $0x28] sm:$0xff] %v1310_v20  ;;  %1928 = vmatmul.mubr.f32.gmra.mxu0 %v1310_v20  ;;  %v1154_v19 = vmul.f32 %v2884_v45, %v1134_v9 }
 0x295   : > { %v964_v26 = vpop.permute.xlu1 %963  ;;  %v1318_v27 = vadd.f32 %v1302_v23, %v1169_v22 }
 0x296   : > { %v985_v59 = vmul.f32 %v964_v26, %v889_v55 }
 0x297   : > { %1334 = vst [vmem:[%s2737_s3 + $0x68] sm:$0xff] %v1318_v27  ;;  %1940 = vmatmul.mubr.f32.gmra.mxu1 %v1318_v27 }
 0x298   : > { %v1005_v15 = vmul.f32 %v2886_v48, %v985_v59 }
 0x29a   : > { %v1082_v35 = vpop.permute.xlu1 %1081  ;;  %v1170_v21 = vadd.f32 %v1154_v19, %v1005_v15 }
 0x29b   : > { %v1126_v36 = vmul.f32 %v1082_v35, %v1046_v29 }
 0x29d   : > { %v1146_v40 = vmul.f32 %v2884_v45, %v1126_v36 }
 0x29f   : > { %v1162_v41 = vadd.f32 %v1146_v40, %v997_v37  ;;  %v929_v42 = vpop.permute.xlu1 %928 }
 0x2a0   : > { %v978_v30 = vmul.f32 %v929_v42, %v882_v5 }
 0x2a1   : > { %v1311_v49 = vadd.f32 %v1295_v53, %v1162_v41 }
 0x2a2   : > { %v998_v22 = vmul.f32 %v2886_v48, %v978_v30 }
 0x2a3   : > { %v969_v52 = vpop.permute.xlu1 %968  ;;  %1327 = vst [vmem:[%s2737_s3 + $0x30] sm:$0xff] %v1311_v49  ;;  %1930 = vmatprep.mubr.f32.mxu0 %v1311_v49 }
 0x2a4   : > { %v986_v3 = vmul.f32 %v969_v52, %v890_v54  ;;  %v1163_v28 = vadd.f32 %v1147_v25, %v998_v22 }
 0x2a6   : > { %v1006_v11 = vmul.f32 %v2886_v48, %v986_v3  ;;  %v1781_v48 = vld [vmem:[%s3211_s20] ss:$0 sm:$0xff] }
 0x2a8   : > { %v1118_v2 = vpop.permute.xlu1 %1117 }
 0x2a9   : > { %v1135_v8 = vmul.f32 %v1118_v2, %v1055_v60 }
 0x2ab   : > { %v1155_v13 = vmul.f32 %v2884_v45, %v1135_v8 }
 0x2ad   : > { %v1171_v17 = vadd.f32 %v1155_v13, %v1006_v11  ;;  %v1263_v18 = vpop.permute.xlu1 %1262 }
 0x2ae   : > { %v1283_v20 = vmul.f32 %v1263_v18, %v1203_v10 }
 0x2af   : > { %v1320_v32 = vadd.f32 %v1304_v16, %v1171_v17 }
 0x2b0   : > { %v1303_v23 = vmul.f32 %v2893_v61, %v1283_v20 }
 0x2b1   : > { %v1235_v24 = vpop.permute.xlu1 %1234  ;;  %1336 = vst [vmem:[%s2737_s3 + $0x78] sm:$0xff] %v1320_v32 }
 0x2b2   : > { %v1276_v26 = vmul.f32 %v1235_v24, %v1196_v31  ;;  %v1319_v27 = vadd.f32 %v1303_v23, %v1170_v21 }
 0x2b4   : > { %v1296_v6 = vmul.f32 %v2893_v61, %v1276_v26  ;;  %1335 = vst [vmem:[%s2737_s3 + $0x70] sm:$0xff] %v1319_v27  ;;  %1942 = vmatprep.mubr.f32.mxu1 %v1319_v27 }
 0x2b5   : > { %1943 = vmatmul.mubr.f32.gmra.mxu1 %v1320_v32 }
 0x2b6   : > { %v1312_v29 = vadd.f32 %v1296_v6, %v1163_v28 }
 0x2b8   : > { %1328 = vst [vmem:[%s2737_s3 + $0x38] sm:$0xff] %v1312_v29  ;;  %1931 = vmatmul.mubr.f32.gmra.mxu0 %v1312_v29 }
 0x315   : > { %v1923_v44 = vpop.f32.mrf.mxu0 }
 0x316   : > { %v1432_v45 = vadd.f32 %v1923_v44, %v1781_v48 }
 0x317   : > { %v1426_v33 = vpop.f32.mrf.mxu0 }
 0x318   : > { %1506 = vst [vmem:[%s2735_s6 + $0x8] sm:$0xff] %v1432_v45  ;;  %v1427_v34 = vadd.f32 %v1781_v48, %v1426_v33 }
 0x31a   : > { %1505 = vst [vmem:[%s2735_s6] sm:$0xff] %v1427_v34 }
 0x32d   : > { %v1935_v61 = vpop.f32.mrf.mxu1 }
 0x32e   : > { %v1472_v35 = vadd.f32 %v1935_v61, %v1781_v48 }
 0x32f   : > { %v1466_v36 = vpop.f32.mrf.mxu1 }
 0x330   : > { %1514 = vst [vmem:[%s2735_s6 + $0x48] sm:$0xff] %v1472_v35  ;;  %v1467_v37 = vadd.f32 %v1781_v48, %v1466_v36 }
 0x332   : > { %1513 = vst [vmem:[%s2735_s6 + $0x40] sm:$0xff] %v1467_v37  ;;  %v1926_v53 = vpop.f32.mrf.mxu0 }
 0x333   : > { %v1442_v40 = vadd.f32 %v1926_v53, %v1781_v48 }
 0x334   : > { %v1436_v41 = vpop.f32.mrf.mxu0  ;;  %v1938_v42 = vpop.f32.mrf.mxu1 }
 0x335   : > { %1508 = vst [vmem:[%s2735_s6 + $0x18] sm:$0xff] %v1442_v40  ;;  %v1437_v46 = vadd.f32 %v1781_v48, %v1436_v41  ;;  %v1482_v47 = vadd.f32 %v1938_v42, %v1781_v48 }
 0x336   : > { %v1476_v49 = vpop.f32.mrf.mxu1 }
 0x337   : > { %1507 = vst [vmem:[%s2735_s6 + $0x10] sm:$0xff] %v1437_v46  ;;  %1516 = vst [vmem:[%s2735_s6 + $0x58] sm:$0xff] %v1482_v47  ;;  %v1477_v38 = vadd.f32 %v1781_v48, %v1476_v49 }
 0x339   : > { %1515 = vst [vmem:[%s2735_s6 + $0x50] sm:$0xff] %v1477_v38 }
 0x353   : > { %v1929_v43 = vpop.f32.mrf.mxu0 }
 0x354   : > { %v1452_v12 = vadd.f32 %v1929_v43, %v1781_v48 }
 0x355   : > { %v1446_v50 = vpop.f32.mrf.mxu0 }
 0x356   : > { %1510 = vst [vmem:[%s2735_s6 + $0x28] sm:$0xff] %v1452_v12  ;;  %v1447_v51 = vadd.f32 %v1781_v48, %v1446_v50 }
 0x357   : > { %v1941_v52 = vpop.f32.mrf.mxu1 }
 0x358   : > { %1509 = vst [vmem:[%s2735_s6 + $0x20] sm:$0xff] %v1447_v51  ;;  %v1492_v54 = vadd.f32 %v1941_v52, %v1781_v48 }
 0x359   : > { %v1486_v55 = vpop.f32.mrf.mxu1 }
 0x35a   : > { %1518 = vst [vmem:[%s2735_s6 + $0x68] sm:$0xff] %v1492_v54  ;;  %v1487_v57 = vadd.f32 %v1781_v48, %v1486_v55 }
 0x35c   : > { %1517 = vst [vmem:[%s2735_s6 + $0x60] sm:$0xff] %v1487_v57 }
 0x375   : > { %v1944_v58 = vpop.f32.mrf.mxu1 }
 0x376   : > { %v1502_v60 = vadd.f32 %v1944_v58, %v1781_v48 }
 0x377   : > { %v1496_v62 = vpop.f32.mrf.mxu1 }
 0x378   : > { %1520 = vst [vmem:[%s2735_s6 + $0x78] sm:$0xff] %v1502_v60  ;;  %v1497_v63 = vadd.f32 %v1781_v48, %v1496_v62  ;;  %v1932_v0 = vpop.f32.mrf.mxu0 }
 0x379   : > { %v1462_v1 = vadd.f32 %v1932_v0, %v1781_v48 }
 0x37a   : > { %1519 = vst [vmem:[%s2735_s6 + $0x70] sm:$0xff] %v1497_v63  ;;  %v1456_v3 = vpop.f32.mrf.mxu0 }
 0x37b   : > { %1512 = vst [vmem:[%s2735_s6 + $0x38] sm:$0xff] %v1462_v1  ;;  %v1457_v4 = vadd.f32 %v1781_v48, %v1456_v3 }
 0x37d   : > { %1511 = vst [vmem:[%s2735_s6 + $0x30] sm:$0xff] %v1457_v4 }
 0x37e PF: > { %s3212_s19 = sld [smem:[#allocation21_spill]]  ;;  %s1540_s23 = sshll.u32 %s2735_s6, 4  ;;  %s3022_s23 = int_to_ptr.vmem [resolvable:$true] %s1540_s23 }
 0x37f   : > { %s3213_s1 = sld [smem:[#allocation34_spill]]  ;;  %s1522_s4 = scalar_lea.sflag [#allocation5], %s2708_s8 }
 0x380   : > { %s2265_s7 = scalar_lea.vmem %s3022_s23, 2048  ;;  %s2453_s26 = smov [#allocation9]  }
 0x381   : > { %p2266_p9 = scmp.ne.s32.totalorder %s3022_s23, %s2265_s7  ;;  %s2269_s27 = sshll.u32 %s2453_s26, 4  ;;  %s2270_s27 = int_to_ptr.vmem [resolvable:$false] %s2269_s27 }
 0x382   : > { %s2271_s9 = scalar_lea.vmem %s2270_s27, 4096  ;;  %p2272_p12 = scmp.lt.s32.totalorder %s3022_s23, %s2270_s27 }
 0x383   : > { %p2267_p11 = pnand %p2266_p9, %p2675_p3  ;;  %p2273_p4 = scmp.lt.s32.totalorder %s2271_s9, %s2265_s7 }
 0x384   : > { %s1791_s18 = sshll.u32 %s3212_s19, 11 }
 0x385   : > { %s3019_s15 = scalar_lea.hbm %s3213_s1, %s1791_s18  ;;  %p2268_p10 = pneg %p2267_p11 }
 0x386   : > { %p2274_p7 = por %p2273_p4, %p2272_p12 }
 0x388   : > { %p2275_p5 = pnand %p2274_p7, %p2268_p10 }
 0x38a   : > { %2278 = shalt.err (!%p2275_p5)
}
 0x38b   : > { %s2279_s6 = scalar_lea.hbm %s3019_s15, 2048  ;;  %s2283_s5 = scalar_lea.hbm %s3213_s1, 6144 }
 0x38c   : > { %p2280_p0 = scmp.ne.s32.totalorder %s3019_s15, %s2279_s6  ;;  %p2284_p13 = scmp.lt.s32.totalorder %s3019_s15, %s3213_s1 }
 0x38d   : > { %p2285_p2 = scmp.lt.s32.totalorder %s2283_s5, %s2279_s6 }
 0x38e   : > { %p2281_p6 = pnand %p2280_p0, %p2675_p3 }
 0x38f   : > { %p2286_p1 = por %p2285_p2, %p2284_p13 }
 0x390   : > { %p2282_p8 = pneg %p2281_p6 }
 0x392   : > { %p2287_p9 = pnand %p2286_p1, %p2282_p8 }
 0x394   : > { %2290 = shalt.err (!%p2287_p9)
}
 0x395   : > { %s2454_s25 = smov 128   ;;  %s2455_s24 = smov 8  }
 0x396   : > { %2003 = dma.vmem_to_hbm [thread:$0]  (%p2675_p3), %s3022_s23, 2048, %s3019_s15, %s1522_s4, %s2454_s25, %s2454_s25, %s2455_s24  }
 0x397   : > { %s3214_s27 = sld [smem:[#allocation35_spill]]  ;;  %s1556_s11 = sshll.u32 %s2737_s3, 4  ;;  %s3058_s11 = int_to_ptr.vmem [resolvable:$true] %s1556_s11 }
 0x398   : > { %s1527_s12 = scalar_lea.sflag [#allocation11], %s2708_s8  ;;  %s2291_s5 = scalar_lea.vmem %s3058_s11, 2048 }
 0x399   : > { %p2292_p11 = scmp.ne.s32.totalorder %s3058_s11, %s2291_s5  ;;  %s2456_s13 = smov [#allocation10]  }
 0x39a   : > { %s2295_s15 = sshll.u32 %s2456_s13, 4  ;;  %s2296_s15 = int_to_ptr.vmem [resolvable:$false] %s2295_s15 }
 0x39b   : > { %p2293_p10 = pnand %p2292_p11, %p2675_p3  ;;  %s2297_s19 = scalar_lea.vmem %s2296_s15, 4096 }
 0x39c   : > { %p2298_p4 = scmp.lt.s32.totalorder %s3058_s11, %s2296_s15  ;;  %p2299_p7 = scmp.lt.s32.totalorder %s2297_s19, %s2291_s5 }
 0x39d   : > { %s3215_s6 = smov %s3214_s27  ;;  %s3055_s9 = scalar_lea.hbm %s3214_s27, %s1791_s18 }
 0x39e   : > { %p2294_p12 = pneg %p2293_p10  ;;  %p2300_p5 = por %p2299_p7, %p2298_p4 }
 0x3a0   : > { %p2301_p0 = pnand %p2300_p5, %p2294_p12 }
 0x3a2   : > { %2304 = shalt.err (!%p2301_p0)
}
 0x3a3   : > { %s2305_s3 = scalar_lea.hbm %s3055_s9, 2048  ;;  %s2309_s23 = scalar_lea.hbm %s3215_s6, 6144 }
 0x3a4   : > { %p2306_p6 = scmp.ne.s32.totalorder %s3055_s9, %s2305_s3  ;;  %p2310_p2 = scmp.lt.s32.totalorder %s3055_s9, %s3215_s6 }
 0x3a5   : > { %p2311_p1 = scmp.lt.s32.totalorder %s2309_s23, %s2305_s3 }
 0x3a6   : > { %p2307_p8 = pnand %p2306_p6, %p2675_p3 }
 0x3a7   : > { %p2312_p9 = por %p2311_p1, %p2310_p2 }
 0x3a8   : > { %p2308_p13 = pneg %p2307_p8 }
 0x3aa   : > { %p2313_p11 = pnand %p2312_p9, %p2308_p13 }
 0x3ac   : > { %2316 = shalt.err (!%p2313_p11)
}
 0x3ad   : > { %2004 = dma.vmem_to_hbm [thread:$0]  (%p2675_p3), %s3058_s11, 2048, %s3055_s9, %s1527_s12, %s2454_s25, %s2454_s25, %s2455_s24  }
 0x3ae PF: > { %s3216_s7 = sld [smem:[#allocation17_spill]]  ;;  %p2028_p10 = scmp.ge.s32.totalorder %s2439_s17, 2 }
 0x3af   : > { %s3217_s26 = sld [smem:[#allocation25_spill]] }
 0x3b4   : > { %s1571_s27 = sand.u32 1, %s3216_s7  }
 0x3b5   : > { %p3218_p12 = scmp.ne.s32.totalorder %s3217_s26, 0  ;;  %s1572_s5 = scalar_lea.sflag [#allocation5], %s1571_s27 }
 0x3b7   : > { %p2019_p4 = pnand %p2028_p10, %p3218_p12 }
 0x3b9   : > { %p2020_p7 = pneg %p2019_p4 }
 0x3bb   : > { %2382 = dma.done.wait (%p2020_p7), %s1572_s5, 2048  }
 0x3bc   : > { %2384 = vsyncadd (%p2020_p7), %s1572_s5, 4294965248  ;;  %s1581_s13 = scalar_lea.sflag [#allocation11], %s1571_s27 }
 0x3bd   : > { %2386 = dma.done.wait (%p2020_p7), %s1581_s13, 2048  }
 0x3be   : > { %2388 = vsyncadd (%p2020_p7), %s1581_s13, 4294965248  ;;  %s31_s17 = sadd.s32 1, %s2439_s17   ;;  %s3220_s25 = sld [smem:[#allocation18_spill]] }
 0x3bf   : > { %p3089_p5 = scmp.ge.s32.totalorder %s31_s17, 29   ;;  %s3221_s12 = sld [smem:[#allocation22_spill]] }
 0x3c0   : > { %s3222_s24 = sld [smem:[#allocation26_spill]]  ;;  %s3226_s27 = smov %s2395_s28 }
 0x3c1   : > { %s3223_s15 = sld [smem:[#allocation27_spill]]  ;;  %s3227_s28 = smov %s2399_s29 }
 0x3c2   : > { %s3224_s19 = sld [smem:[#allocation28_spill]]  ;;  %s3228_s29 = smov %s2669_s22 }
 0x3c3   : > { %s3230_s9 = smov %s2411_s10  ;;  %s3231_s10 = smov %s2645_s21 }
 0x3c4   : > { %s3229_s30 = smov %s3220_s25  ;;  %s3232_s11 = smov %s2427_s14 }
 0x3c5   : > { %s3233_s13 = smov %s2435_s16  ;;  %30 = sbr.rel (!%p3089_p5) target bundleno = 22 (0x16), region = 144 }
 0x3c6   : > { %s3234_s14 = smov %s3222_s24 }
 0x3c8   : > { %s3235_s16 = smov %s3224_s19 }
 0x3ca   :  { %1586 = vsyncpa [#allocation4], 1 }
 0x3cb   :  { %1588 = vsyncpa [#allocation4 + $0x1], 1 }
 0x3cc   :  { %1589 = vsyncpa [#allocation7], 1 }
 0x3cd   :  { %1591 = vsyncpa [#allocation7 + $0x1], 1 }
 0x3ce   :  { %1592 = vsyncpa [#allocation5], 1 }
 0x3cf   :  { %1594 = vsyncpa [#allocation5 + $0x1], 1 }
 0x3d0   :  { %1595 = vsyncpa [#allocation11], 1 }
 0x3d1   :  { %1597 = vsyncpa [#allocation11 + $0x1], 1 }

</bundles_post_ra>
